<compile_context>
chip_gen: v7x
topology: tpu7x:2x2x1
jax: 0.10.0
libtpu: 0.0.40
codegen_flags: <defaults>
</compile_context>

<pallas_src>
import math
import functools

import jax
import jax.numpy as jnp
from jax import lax
from jax.experimental import pallas as pl
from jax.experimental.pallas import tpu as pltpu


# ---------------------------------------------------------------------------
# Kernel A: fused head
#   z = x @ Wcat + bcat                  (one bf16 MXU matmul)
#   y = softmax(z[:, :C])                                (linear head)
#   h = z[:, Cpad:Cpad+K] * sigmoid(z[:, Cpad+K:])       (ConvTranspose+GLU)
# Column blocks are padded/ordered so every slice is lane-aligned (128).
# The GLU columns are ordered (i, j, c), i.e. the (H, W*C) activation layout.
# ---------------------------------------------------------------------------
def _head_kernel(x_ref, w_ref, b_ref, y_ref, h_ref, *, C, Cpad, K):
    xb = x_ref[...].astype(jnp.bfloat16)
    z = jnp.dot(xb, w_ref[...], preferred_element_type=jnp.float32) + b_ref[...]
    # softmax over the (tiny) class logits
    zl = z[:, :C]
    zl = zl - jnp.max(zl, axis=-1, keepdims=True)
    e = jnp.exp(zl)
    y_ref[...] = (e / jnp.sum(e, axis=-1, keepdims=True)).astype(y_ref.dtype)
    # GLU over the ConvTranspose result (value / gate halves are separate slabs)
    a = z[:, Cpad:Cpad + K]
    g = z[:, Cpad + K:]
    h_ref[...] = (a * jax.nn.sigmoid(g)).astype(h_ref.dtype)


def head_forward(x, wcat, bcat, *, C, Cpad, K):
    B, F = x.shape
    Wtot = wcat.shape[1]
    return pl.pallas_call(
        functools.partial(_head_kernel, C=C, Cpad=Cpad, K=K),
        out_shape=(jax.ShapeDtypeStruct((B, C), jnp.float32),
                   jax.ShapeDtypeStruct((B, K), jnp.bfloat16)),
        grid=(1,),
        in_specs=[
            pl.BlockSpec((B, F), lambda i: (0, 0)),
            pl.BlockSpec((F, Wtot), lambda i: (0, 0)),
            pl.BlockSpec((1, Wtot), lambda i: (0, 0)),
        ],
        out_specs=[
            pl.BlockSpec((B, C), lambda i: (0, 0)),
            pl.BlockSpec((B, K), lambda i: (0, 0)),
        ],
        compiler_params=pltpu.CompilerParams(dimension_semantics=("arbitrary",)),
    )(x, wcat, bcat)


# ---------------------------------------------------------------------------
# Kernel B: [Upsample x2 -> Conv3x3(pad=1, no bias) -> BN(folded) -> GLU]
#   x_ref : (1, H, W*Cin)          activation slab (bf16, channel fastest)
#   pg_ref: (3, W*Cin, 2*Wo*Cop)   folded (width-upsample+pad) x (conv row ky)
#                                  weights, BN scale folded, GLU halves concat'd
#   l_ref : (3, Ho, H)             0/1 height upsample+pad row selectors (bf16)
#   b_ref : (1, 2*Wo*Cop)          folded BN bias, broadcast over rows
# Output : (1, Ho, Wo*Cop)         next layer's (H, W*C) slab (lane-dense store)
# ---------------------------------------------------------------------------
def _up_block_kernel(x_ref, pg_ref, l_ref, b_ref, o_ref, *, apply_sigmoid):
    x = x_ref[0]                                   # (H, W*Cin) bf16
    Ho = o_ref.shape[1]
    half = o_ref.shape[2]                          # Wo * Cout_pad (128-aligned)
    acc = jnp.broadcast_to(b_ref[...], (Ho, 2 * half))
    for ky in range(3):                            # static unroll, 3+3 MXU matmuls
        m = jnp.dot(x, pg_ref[ky], preferred_element_type=jnp.float32)
        acc = acc + jnp.dot(l_ref[ky], m.astype(jnp.bfloat16),
                            preferred_element_type=jnp.float32)
    y = acc[:, :half] * jax.nn.sigmoid(acc[:, half:])          # GLU (aligned split)
    if apply_sigmoid:
        y = jax.nn.sigmoid(y)
    o_ref[0] = y.astype(o_ref.dtype)


def up_block_forward(h, blk, *, apply_sigmoid=False, out_dtype=jnp.bfloat16):
    B, H, WC = h.shape
    pg, ls, brow = blk["pg"], blk["l"], blk["bias"]
    Ho = ls.shape[1]
    half = brow.shape[1] // 2
    return pl.pallas_call(
        functools.partial(_up_block_kernel, apply_sigmoid=apply_sigmoid),
        out_shape=jax.ShapeDtypeStruct((B, Ho, half), out_dtype),
        grid=(B,),
        in_specs=[
            pl.BlockSpec((1, H, WC), lambda b: (b, 0, 0)),
            pl.BlockSpec(pg.shape, lambda b: (0, 0, 0)),
            pl.BlockSpec(ls.shape, lambda b: (0, 0, 0)),
            pl.BlockSpec(brow.shape, lambda b: (0, 0)),
        ],
        out_specs=pl.BlockSpec((1, Ho, half), lambda b: (b, 0, 0)),
        compiler_params=pltpu.CompilerParams(dimension_semantics=("parallel",)),
    )(h, pg, ls, brow)


# ---------------------------------------------------------------------------
# Init-time weight folding (all per-forward XLA transforms removed).
# ---------------------------------------------------------------------------
def _upsample_pad_matrix(n):
    """M (n, 2n+2): M[i, r] = 1 iff padded nearest-2x-upsampled position r
    reads input position i (r in [1, 2n], (r-1)//2 == i)."""
    r = jnp.arange(2 * n + 2)
    src = (r - 1) // 2
    valid = (r >= 1) & (r <= 2 * n)
    return ((src[None, :] == jnp.arange(n)[:, None]) & valid[None, :]).astype(jnp.float32)


def _fold_up_block(wconv, gamma, beta, mean, var, H, W, eps=1e-5, cout_pad=None):
    """Fold Upsample+pad+Conv3x3+BN into {pg, l, bias} for _up_block_kernel.

    cout_pad >= cout zero-pads the per-pixel output channels so the output lane
    width (Wo * cout_pad) and the GLU split are 128-aligned."""
    c2, cin, _, _ = wconv.shape
    cout = c2 // 2
    if cout_pad is None:
        cout_pad = cout
    Ho, Wo = 2 * H, 2 * W

    scale = gamma / jnp.sqrt(var + eps)
    shift = beta - mean * scale
    wf = wconv * scale[:, None, None, None]          # BN scale folded in f32

    upw = _upsample_pad_matrix(W)                    # (W, Wo+2)
    uph = _upsample_pad_matrix(H)                    # (H, Ho+2)
    L = uph.T                                        # (Ho+2, H)
    ls = jnp.stack([L[ky:ky + Ho] for ky in range(3)], axis=0)        # (3, Ho, H)
    ls = ls.astype(jnp.bfloat16)                     # 0/1 -> exact in bf16

    q = jnp.arange(Wo + 2)
    j = jnp.arange(Wo)
    k = jnp.arange(3)
    sel = (q[:, None, None] == (j[None, :, None] + k[None, None, :])).astype(jnp.float32)

    pgs = []
    for ky in range(3):
        # G[q, c, o, j] = Wf[o, c, ky, q - j] for q - j in [0, 3)
        g = jnp.einsum('qjk,ock->qcoj', sel, wf[:, :, ky, :])
        g = g.reshape(Wo + 2, cin, 2, cout, Wo)      # split o -> (glu half, co)
        g = jnp.transpose(g, (0, 1, 2, 4, 3))        # columns -> (half, j, co)
        if cout_pad != cout:
            g = jnp.pad(g, ((0, 0), (0, 0), (0, 0), (0, 0), (0, cout_pad - cout)))
        g = g.reshape(Wo + 2, cin, 2 * Wo * cout_pad)
        pg = jnp.einsum('wq,qcn->wcn', upw, g)       # fold width upsample+pad
        pgs.append(pg.reshape(W * cin, 2 * Wo * cout_pad))
    pg = jnp.stack(pgs, axis=0).astype(jnp.bfloat16)  # (3, W*Cin, 2*Wo*Cout_pad)

    brow = shift.reshape(2, cout)
    if cout_pad != cout:
        brow = jnp.pad(brow, ((0, 0), (0, cout_pad - cout)))
    brow = jnp.broadcast_to(brow[:, None, :], (2, Wo, cout_pad))
    brow = brow.reshape(1, 2 * Wo * cout_pad).astype(jnp.float32)
    return dict(pg=pg, l=ls, bias=brow)


# ---------------------------------------------------------------------------
# GRNNGenerator: parameter construction + forward
# ---------------------------------------------------------------------------
class GRNNGeneratorPallas:
    def __init__(self, num_classes, in_features, image_shape, key):
        self.num_classes = num_classes
        self.in_features = in_features
        self.image_shape = tuple(image_shape)
        image_channel, image_size = image_shape[0], image_shape[1]
        block_nums = int(math.log2(image_size) - 3)
        self.block_nums = block_nums

        keys = list(jax.random.split(key, 64))
        kit = iter(keys)

        def nrm(shape, s=0.1):
            return (s * jax.random.normal(next(kit), shape)).astype(jnp.float32)

        # ---- raw parameters (kept for the pure-JAX reference check) ----
        self.lin_w = nrm((in_features, num_classes))
        self.lin_b = nrm((num_classes,))
        ct_out = image_size * (2 ** block_nums) * 2
        self.ct_w = nrm((in_features, ct_out, 4, 4))   # torch ConvTranspose2d layout
        self.ct_b = nrm((ct_out,))

        def make_raw(cin, cout):
            c2 = 2 * cout
            return dict(
                w=nrm((c2, cin, 3, 3)),                # torch Conv2d OIHW, no bias
                gamma=(1.0 + 0.1 * jax.random.normal(next(kit), (c2,))).astype(jnp.float32),
                beta=nrm((c2,)),
                mean=nrm((c2,)),
                var=(1.0 + 0.1 * jax.random.uniform(next(kit), (c2,))).astype(jnp.float32),
            )

        self.raw_blocks = []
        for bn in reversed(range(block_nums)):
            self.raw_blocks.append(make_raw((2 ** (bn + 1)) * image_size,
                                            (2 ** bn) * image_size))
        self.raw_out = make_raw(image_size, image_channel)

        # ---- precomputed kernel-ready parameters (all folds done at init) ----
        C = num_classes
        self.ch = ct_out // 2
        self.K = self.ch * 16
        self.Cpad = ((C + 127) // 128) * 128           # lane-align the GLU slabs

        wa = jnp.transpose(self.ct_w[:, :self.ch], (0, 2, 3, 1)).reshape(in_features, self.K)
        wb = jnp.transpose(self.ct_w[:, self.ch:], (0, 2, 3, 1)).reshape(in_features, self.K)
        wlin_p = jnp.concatenate(
            [self.lin_w, jnp.zeros((in_features, self.Cpad - C), jnp.float32)], axis=1)
        self.head_w = jnp.concatenate([wlin_p, wa, wb], axis=1).astype(jnp.bfloat16)

        ba = jnp.broadcast_to(self.ct_b[:self.ch][None, None, :], (4, 4, self.ch)).reshape(self.K)
        bb = jnp.broadcast_to(self.ct_b[self.ch:][None, None, :], (4, 4, self.ch)).reshape(self.K)
        blin_p = jnp.concatenate([self.lin_b, jnp.zeros((self.Cpad - C,), jnp.float32)])
        self.head_b = jnp.concatenate([blin_p, ba, bb]).reshape(1, self.Cpad + 2 * self.K)
        self.head_b = self.head_b.astype(jnp.float32)

        self.blocks = []
        H = 4
        for raw in self.raw_blocks:
            # Intermediate blocks: Wo*Cout is already a multiple of 128 for any
            # power-of-two image_size >= 16, so no padding needed.
            self.blocks.append(_fold_up_block(raw["w"], raw["gamma"], raw["beta"],
                                              raw["mean"], raw["var"], H, H))
            H *= 2

        # Final block: pad per-pixel channels so Wo*cout_pad is 128-aligned
        # (lane-dense stores + aligned in-kernel GLU split).
        Wo_final = 2 * H
        gpad = 128 // math.gcd(Wo_final, 128)
        self.cout_pad = max(image_channel,
                            ((image_channel + gpad - 1) // gpad) * gpad)
        self.out_block = _fold_up_block(self.raw_out["w"], self.raw_out["gamma"],
                                        self.raw_out["beta"], self.raw_out["mean"],
                                        self.raw_out["var"], H, H,
                                        cout_pad=self.cout_pad)
        self.final_size = 2 * H

    def __call__(self, x):
        B = x.shape[0]
        # fused: softmax(linear(x))  and  ConvTranspose2d(4x4)+GLU on x.view(B,F,1,1)
        y, h = head_forward(x, self.head_w, self.head_b,
                            C=self.num_classes, Cpad=self.Cpad, K=self.K)
        h = h.reshape(B, 4, 4 * self.ch)               # (B, H, W*C), free reshape
        for blk in self.blocks:
            h = up_block_forward(h, blk)
        h = up_block_forward(h, self.out_block, apply_sigmoid=True,
                             out_dtype=jnp.float32)
        S, Cimg = self.final_size, self.image_shape[0]
        img = h.reshape(B, S, S, self.cout_pad)[..., :Cimg]    # drop lane padding
        img = img.transpose(0, 3, 1, 2)                        # NHWC -> NCHW
        return img, y


# ---------------------------------------------------------------------------
# Pure-JAX (f32) reference of the PyTorch module, for a tolerance check.
# ---------------------------------------------------------------------------
def _reference_forward(model, x, eps=1e-5):
    y = jax.nn.softmax(x @ model.lin_w + model.lin_b, axis=-1)
    t = jnp.einsum('bf,foij->boij', x, model.ct_w) + model.ct_b[None, :, None, None]
    ch = model.ch
    h = t[:, :ch] * jax.nn.sigmoid(t[:, ch:])          # NCHW

    def up(h, p):
        hu = jnp.repeat(jnp.repeat(h, 2, axis=2), 2, axis=3)
        z = lax.conv_general_dilated(hu, p["w"], window_strides=(1, 1),
                                     padding=((1, 1), (1, 1)),
                                     dimension_numbers=("NCHW", "OIHW", "NCHW"))
        sc = p["gamma"] / jnp.sqrt(p["var"] + eps)
        sh = p["beta"] - p["mean"] * sc
        z = z * sc[None, :, None, None] + sh[None, :, None, None]
        c = z.shape[1] // 2
        return z[:, :c] * jax.nn.sigmoid(z[:, c:])

    for p in model.raw_blocks:
        h = up(h, p)
    h = up(h, model.raw_out)
    return jax.nn.sigmoid(h), y


if __name__ == "__main__":
    key = jax.random.PRNGKey(0)
    num_classes = 10
    in_features = 32
    image_shape = (3, 16, 16)   # => block_nums = 1
    batch = 2

    k_param, k_x = jax.random.split(key)
    model = GRNNGeneratorPallas(num_classes, in_features, image_shape, k_param)
    x = jax.random.normal(k_x, (batch, in_features), dtype=jnp.float32)

    fwd = jax.jit(lambda xx: model(xx))
    img, y = fwd(x)
    jax.block_until_ready((img, y))

    assert img.shape == (batch,) + image_shape, img.shape
    assert y.shape == (batch, num_classes), y.shape
    assert bool(jnp.all(jnp.isfinite(img))) and bool(jnp.all(jnp.isfinite(y)))

    # correctness vs. the f32 reference (loose tolerance: bf16 MXU operands)
    img_ref, y_ref = _reference_forward(model, x)
    img_err = float(jnp.max(jnp.abs(img - img_ref)))
    y_err = float(jnp.max(jnp.abs(y - y_ref)))
    assert img_err < 5e-2, img_err
    assert y_err < 5e-2, y_err

    print("KERNEL_OK")
</pallas_src>

<mosaic_0001>
module attributes {stable_mosaic.version = 11 : i64} {
  func.func @_head_kernel(%arg0: i32, %arg1: memref<2x32xf32, #tpu.memory_space<vmem>>, %arg2: memref<32x1152xbf16, #tpu.memory_space<vmem>>, %arg3: memref<1x1152xf32, #tpu.memory_space<vmem>>, %arg4: memref<2x10xf32, #tpu.memory_space<vmem>>, %arg5: memref<2x512xbf16, #tpu.memory_space<vmem>>) attributes {dimension_semantics = [#tpu.dimension_semantics<arbitrary>], iteration_bounds = array<i64: 1>, scalar_prefetch = 0 : i64, scratch_operands = 0 : i64, tpu.core_type = #tpu.core_type<tc>, window_params = [{pipeline_mode = #tpu.pipeline_mode<synchronous>, transform_indices = @transform_0, window_bounds = array<i64: 2, 32>}, {pipeline_mode = #tpu.pipeline_mode<synchronous>, transform_indices = @transform_1, window_bounds = array<i64: 32, 1152>}, {pipeline_mode = #tpu.pipeline_mode<synchronous>, transform_indices = @transform_2, window_bounds = array<i64: 1, 1152>}, {pipeline_mode = #tpu.pipeline_mode<synchronous>, transform_indices = @transform_3, window_bounds = array<i64: 2, 10>}, {pipeline_mode = #tpu.pipeline_mode<synchronous>, transform_indices = @transform_4, window_bounds = array<i64: 2, 512>}]} {
    %c0 = arith.constant 0 : index
    %c0_0 = arith.constant 0 : index
    %0 = vector.load %arg1[%c0, %c0_0] : memref<2x32xf32, #tpu.memory_space<vmem>>, vector<2x32xf32>
    %1 = arith.truncf %0 : vector<2x32xf32> to vector<2x32xbf16>
    %c0_1 = arith.constant 0 : index
    %c0_2 = arith.constant 0 : index
    %2 = vector.load %arg2[%c0_1, %c0_2] : memref<32x1152xbf16, #tpu.memory_space<vmem>>, vector<32x1152xbf16>
    %cst = arith.constant dense<0.000000e+00> : vector<2x1152xf32>
    %3 = tpu.matmul %1, %2, %cst {dimension_numbers = #tpu.dot_dimension_numbers<[1], [0], [0], [1], [0, 0, 1, 1], [], []>} : vector<2x32xbf16>, vector<32x1152xbf16>, vector<2x1152xf32> -> vector<2x1152xf32>
    %c0_3 = arith.constant 0 : index
    %c0_4 = arith.constant 0 : index
    %4 = vector.load %arg3[%c0_3, %c0_4] : memref<1x1152xf32, #tpu.memory_space<vmem>>, vector<1x1152xf32>
    %5 = vector.broadcast %4 : vector<1x1152xf32> to vector<2x1152xf32>
    %6 = arith.addf %3, %5 : vector<2x1152xf32>
    %7 = vector.extract_strided_slice %6 {offsets = [0, 0], sizes = [2, 10], strides = [1, 1]} : vector<2x1152xf32> to vector<2x10xf32>
    %cst_5 = arith.constant dense<0xFF800000> : vector<2xf32>
    %8 = vector.multi_reduction <maximumf>, %7, %cst_5 [1] : vector<2x10xf32> to vector<2xf32>
    %9 = vector.shape_cast %8 : vector<2xf32> to vector<2x1xf32>
    %10 = vector.broadcast %9 : vector<2x1xf32> to vector<2x10xf32>
    %11 = arith.subf %7, %10 : vector<2x10xf32>
    %12 = math.exp %11 : vector<2x10xf32>
    %cst_6 = arith.constant dense<0.000000e+00> : vector<2xf32>
    %13 = vector.multi_reduction <add>, %12, %cst_6 [1] : vector<2x10xf32> to vector<2xf32>
    %14 = vector.shape_cast %13 : vector<2xf32> to vector<2x1xf32>
    %15 = vector.broadcast %14 : vector<2x1xf32> to vector<2x10xf32>
    %16 = arith.divf %12, %15 : vector<2x10xf32>
    %c0_7 = arith.constant 0 : index
    %c0_8 = arith.constant 0 : index
    %17 = vector.load %arg4[%c0_7, %c0_8] : memref<2x10xf32, #tpu.memory_space<vmem>>, vector<2x10xf32>
    tpu.vector_store %arg4[%c0_7, %c0_8], %16 {strides = array<i32>} : memref<2x10xf32, #tpu.memory_space<vmem>>, vector<2x10xf32>,
    %18 = vector.extract_strided_slice %6 {offsets = [0, 128], sizes = [2, 512], strides = [1, 1]} : vector<2x1152xf32> to vector<2x512xf32>
    %19 = vector.extract_strided_slice %6 {offsets = [0, 640], sizes = [2, 512], strides = [1, 1]} : vector<2x1152xf32> to vector<2x512xf32>
    %20 = arith.negf %19 : vector<2x512xf32>
    %21 = math.exp %20 : vector<2x512xf32>
    %cst_9 = arith.constant 1.000000e+00 : f32
    %22 = vector.broadcast %cst_9 : f32 to vector<2x512xf32>
    %23 = arith.addf %22, %21 : vector<2x512xf32>
    %24 = arith.divf %22, %23 : vector<2x512xf32>
    %25 = arith.mulf %18, %24 : vector<2x512xf32>
    %26 = arith.truncf %25 : vector<2x512xf32> to vector<2x512xbf16>
    %c0_10 = arith.constant 0 : index
    %c0_11 = arith.constant 0 : index
    %27 = vector.load %arg5[%c0_10, %c0_11] : memref<2x512xbf16, #tpu.memory_space<vmem>>, vector<2x512xbf16>
    tpu.vector_store %arg5[%c0_10, %c0_11], %26 {strides = array<i32>} : memref<2x512xbf16, #tpu.memory_space<vmem>>, vector<2x512xbf16>,
    return
  }
  func.func @transform_0(%arg0: i32) -> (i32, i32) {
    %c0_i32 = arith.constant 0 : i32
    %c0_i32_0 = arith.constant 0 : i32
    %c0_i32_1 = arith.constant 0 : i32
    return %c0_i32, %c0_i32_0 : i32, i32
  }
  func.func @transform_1(%arg0: i32) -> (i32, i32) {
    %c0_i32 = arith.constant 0 : i32
    %c0_i32_0 = arith.constant 0 : i32
    %c0_i32_1 = arith.constant 0 : i32
    return %c0_i32, %c0_i32_0 : i32, i32
  }
  func.func @transform_2(%arg0: i32) -> (i32, i32) {
    %c0_i32 = arith.constant 0 : i32
    %c0_i32_0 = arith.constant 0 : i32
    %c0_i32_1 = arith.constant 0 : i32
    return %c0_i32, %c0_i32_0 : i32, i32
  }
  func.func @transform_3(%arg0: i32) -> (i32, i32) {
    %c0_i32 = arith.constant 0 : i32
    %c0_i32_0 = arith.constant 0 : i32
    %c0_i32_1 = arith.constant 0 : i32
    return %c0_i32, %c0_i32_0 : i32, i32
  }
  func.func @transform_4(%arg0: i32) -> (i32, i32) {
    %c0_i32 = arith.constant 0 : i32
    %c0_i32_0 = arith.constant 0 : i32
    %c0_i32_1 = arith.constant 0 : i32
    return %c0_i32, %c0_i32_0 : i32, i32
  }
}

module attributes {stable_mosaic.version = 11 : i64} {
  func.func @_up_block_kernel(%arg0: i32, %arg1: memref<1x4x128xbf16, #tpu.memory_space<vmem>>, %arg2: memref<3x128x256xbf16, #tpu.memory_space<vmem>>, %arg3: memref<3x8x4xbf16, #tpu.memory_space<vmem>>, %arg4: memref<1x256xf32, #tpu.memory_space<vmem>>, %arg5: memref<1x8x128xbf16, #tpu.memory_space<vmem>>) attributes {dimension_semantics = [#tpu.dimension_semantics<parallel>], iteration_bounds = array<i64: 2>, scalar_prefetch = 0 : i64, scratch_operands = 0 : i64, tpu.core_type = #tpu.core_type<tc>, window_params = [{transform_indices = @transform_0, window_bounds = array<i64: 1, 4, 128>}, {pipeline_mode = #tpu.pipeline_mode<synchronous>, transform_indices = @transform_1, window_bounds = array<i64: 3, 128, 256>}, {pipeline_mode = #tpu.pipeline_mode<synchronous>, transform_indices = @transform_2, window_bounds = array<i64: 3, 8, 4>}, {pipeline_mode = #tpu.pipeline_mode<synchronous>, transform_indices = @transform_3, window_bounds = array<i64: 1, 256>}, {transform_indices = @transform_4, window_bounds = array<i64: 1, 8, 128>}]} {
    %c0 = arith.constant 0 : index
    %c0_0 = arith.constant 0 : index
    %c0_1 = arith.constant 0 : index
    %0 = vector.load %arg1[%c0, %c0_0, %c0_1] : memref<1x4x128xbf16, #tpu.memory_space<vmem>>, vector<1x4x128xbf16>
    %1 = vector.shape_cast %0 : vector<1x4x128xbf16> to vector<4x128xbf16>
    %c0_2 = arith.constant 0 : index
    %c0_3 = arith.constant 0 : index
    %2 = vector.load %arg4[%c0_2, %c0_3] : memref<1x256xf32, #tpu.memory_space<vmem>>, vector<1x256xf32>
    %3 = vector.shape_cast %2 : vector<1x256xf32> to vector<1x256xf32>
    %4 = vector.broadcast %3 : vector<1x256xf32> to vector<8x256xf32>
    %c0_4 = arith.constant 0 : index
    %c0_5 = arith.constant 0 : index
    %c0_6 = arith.constant 0 : index
    %5 = vector.load %arg2[%c0_4, %c0_5, %c0_6] : memref<3x128x256xbf16, #tpu.memory_space<vmem>>, vector<1x128x256xbf16>
    %6 = vector.shape_cast %5 : vector<1x128x256xbf16> to vector<128x256xbf16>
    %cst = arith.constant dense<0.000000e+00> : vector<4x256xf32>
    %7 = tpu.matmul %1, %6, %cst {dimension_numbers = #tpu.dot_dimension_numbers<[1], [0], [0], [1], [0, 0, 1, 1], [], []>} : vector<4x128xbf16>, vector<128x256xbf16>, vector<4x256xf32> -> vector<4x256xf32>
    %c0_7 = arith.constant 0 : index
    %c0_8 = arith.constant 0 : index
    %c0_9 = arith.constant 0 : index
    %8 = vector.load %arg3[%c0_7, %c0_8, %c0_9] : memref<3x8x4xbf16, #tpu.memory_space<vmem>>, vector<1x8x4xbf16>
    %9 = vector.shape_cast %8 : vector<1x8x4xbf16> to vector<8x4xbf16>
    %10 = arith.truncf %7 : vector<4x256xf32> to vector<4x256xbf16>
    %cst_10 = arith.constant dense<0.000000e+00> : vector<8x256xf32>
    %11 = tpu.matmul %9, %10, %cst_10 {dimension_numbers = #tpu.dot_dimension_numbers<[1], [0], [0], [1], [0, 0, 1, 1], [], []>} : vector<8x4xbf16>, vector<4x256xbf16>, vector<8x256xf32> -> vector<8x256xf32>
    %12 = arith.addf %4, %11 : vector<8x256xf32>
    %c1 = arith.constant 1 : index
    %c0_11 = arith.constant 0 : index
    %c0_12 = arith.constant 0 : index
    %13 = vector.load %arg2[%c1, %c0_11, %c0_12] : memref<3x128x256xbf16, #tpu.memory_space<vmem>>, vector<1x128x256xbf16>
    %14 = vector.shape_cast %13 : vector<1x128x256xbf16> to vector<128x256xbf16>
    %cst_13 = arith.constant dense<0.000000e+00> : vector<4x256xf32>
    %15 = tpu.matmul %1, %14, %cst_13 {dimension_numbers = #tpu.dot_dimension_numbers<[1], [0], [0], [1], [0, 0, 1, 1], [], []>} : vector<4x128xbf16>, vector<128x256xbf16>, vector<4x256xf32> -> vector<4x256xf32>
    %c1_14 = arith.constant 1 : index
    %c0_15 = arith.constant 0 : index
    %c0_16 = arith.constant 0 : index
    %16 = vector.load %arg3[%c1_14, %c0_15, %c0_16] : memref<3x8x4xbf16, #tpu.memory_space<vmem>>, vector<1x8x4xbf16>
    %17 = vector.shape_cast %16 : vector<1x8x4xbf16> to vector<8x4xbf16>
    %18 = arith.truncf %15 : vector<4x256xf32> to vector<4x256xbf16>
    %cst_17 = arith.constant dense<0.000000e+00> : vector<8x256xf32>
    %19 = tpu.matmul %17, %18, %cst_17 {dimension_numbers = #tpu.dot_dimension_numbers<[1], [0], [0], [1], [0, 0, 1, 1], [], []>} : vector<8x4xbf16>, vector<4x256xbf16>, vector<8x256xf32> -> vector<8x256xf32>
    %20 = arith.addf %12, %19 : vector<8x256xf32>
    %c2 = arith.constant 2 : index
    %c0_18 = arith.constant 0 : index
    %c0_19 = arith.constant 0 : index
    %21 = vector.load %arg2[%c2, %c0_18, %c0_19] : memref<3x128x256xbf16, #tpu.memory_space<vmem>>, vector<1x128x256xbf16>
    %22 = vector.shape_cast %21 : vector<1x128x256xbf16> to vector<128x256xbf16>
    %cst_20 = arith.constant dense<0.000000e+00> : vector<4x256xf32>
    %23 = tpu.matmul %1, %22, %cst_20 {dimension_numbers = #tpu.dot_dimension_numbers<[1], [0], [0], [1], [0, 0, 1, 1], [], []>} : vector<4x128xbf16>, vector<128x256xbf16>, vector<4x256xf32> -> vector<4x256xf32>
    %c2_21 = arith.constant 2 : index
    %c0_22 = arith.constant 0 : index
    %c0_23 = arith.constant 0 : index
    %24 = vector.load %arg3[%c2_21, %c0_22, %c0_23] : memref<3x8x4xbf16, #tpu.memory_space<vmem>>, vector<1x8x4xbf16>
    %25 = vector.shape_cast %24 : vector<1x8x4xbf16> to vector<8x4xbf16>
    %26 = arith.truncf %23 : vector<4x256xf32> to vector<4x256xbf16>
    %cst_24 = arith.constant dense<0.000000e+00> : vector<8x256xf32>
    %27 = tpu.matmul %25, %26, %cst_24 {dimension_numbers = #tpu.dot_dimension_numbers<[1], [0], [0], [1], [0, 0, 1, 1], [], []>} : vector<8x4xbf16>, vector<4x256xbf16>, vector<8x256xf32> -> vector<8x256xf32>
    %28 = arith.addf %20, %27 : vector<8x256xf32>
    %29 = vector.extract_strided_slice %28 {offsets = [0, 0], sizes = [8, 128], strides = [1, 1]} : vector<8x256xf32> to vector<8x128xf32>
    %30 = vector.extract_strided_slice %28 {offsets = [0, 128], sizes = [8, 128], strides = [1, 1]} : vector<8x256xf32> to vector<8x128xf32>
    %31 = arith.negf %30 : vector<8x128xf32>
    %32 = math.exp %31 : vector<8x128xf32>
    %cst_25 = arith.constant 1.000000e+00 : f32
    %33 = vector.broadcast %cst_25 : f32 to vector<8x128xf32>
    %34 = arith.addf %33, %32 : vector<8x128xf32>
    %35 = arith.divf %33, %34 : vector<8x128xf32>
    %36 = arith.mulf %29, %35 : vector<8x128xf32>
    %37 = arith.truncf %36 : vector<8x128xf32> to vector<8x128xbf16>
    %c0_26 = arith.constant 0 : index
    %c0_27 = arith.constant 0 : index
    %c0_28 = arith.constant 0 : index
    %38 = vector.load %arg5[%c0_26, %c0_27, %c0_28] : memref<1x8x128xbf16, #tpu.memory_space<vmem>>, vector<1x8x128xbf16>
    %39 = vector.shape_cast %38 : vector<1x8x128xbf16> to vector<8x128xbf16>
    %40 = vector.shape_cast %37 : vector<8x128xbf16> to vector<1x8x128xbf16>
    tpu.vector_store %arg5[%c0_26, %c0_27, %c0_28], %40 {strides = array<i32>} : memref<1x8x128xbf16, #tpu.memory_space<vmem>>, vector<1x8x128xbf16>,
    return
  }
  func.func @transform_0(%arg0: i32) -> (i32, i32, i32) {
    %c0_i32 = arith.constant 0 : i32
    %c0_i32_0 = arith.constant 0 : i32
    %c0_i32_1 = arith.constant 0 : i32
    return %arg0, %c0_i32, %c0_i32_0 : i32, i32, i32
  }
  func.func @transform_1(%arg0: i32) -> (i32, i32, i32) {
    %c0_i32 = arith.constant 0 : i32
    %c0_i32_0 = arith.constant 0 : i32
    %c0_i32_1 = arith.constant 0 : i32
    %c0_i32_2 = arith.constant 0 : i32
    return %c0_i32, %c0_i32_0, %c0_i32_1 : i32, i32, i32
  }
  func.func @transform_2(%arg0: i32) -> (i32, i32, i32) {
    %c0_i32 = arith.constant 0 : i32
    %c0_i32_0 = arith.constant 0 : i32
    %c0_i32_1 = arith.constant 0 : i32
    %c0_i32_2 = arith.constant 0 : i32
    return %c0_i32, %c0_i32_0, %c0_i32_1 : i32, i32, i32
  }
  func.func @transform_3(%arg0: i32) -> (i32, i32) {
    %c0_i32 = arith.constant 0 : i32
    %c0_i32_0 = arith.constant 0 : i32
    %c0_i32_1 = arith.constant 0 : i32
    return %c0_i32, %c0_i32_0 : i32, i32
  }
  func.func @transform_4(%arg0: i32) -> (i32, i32, i32) {
    %c0_i32 = arith.constant 0 : i32
    %c0_i32_0 = arith.constant 0 : i32
    %c0_i32_1 = arith.constant 0 : i32
    return %arg0, %c0_i32, %c0_i32_0 : i32, i32, i32
  }
}

module attributes {stable_mosaic.version = 11 : i64} {
  func.func @_up_block_kernel(%arg0: i32, %arg1: memref<1x8x128xbf16, #tpu.memory_space<vmem>>, %arg2: memref<3x128x256xbf16, #tpu.memory_space<vmem>>, %arg3: memref<3x16x8xbf16, #tpu.memory_space<vmem>>, %arg4: memref<1x256xf32, #tpu.memory_space<vmem>>, %arg5: memref<1x16x128xf32, #tpu.memory_space<vmem>>) attributes {dimension_semantics = [#tpu.dimension_semantics<parallel>], iteration_bounds = array<i64: 2>, scalar_prefetch = 0 : i64, scratch_operands = 0 : i64, tpu.core_type = #tpu.core_type<tc>, window_params = [{transform_indices = @transform_0, window_bounds = array<i64: 1, 8, 128>}, {pipeline_mode = #tpu.pipeline_mode<synchronous>, transform_indices = @transform_1, window_bounds = array<i64: 3, 128, 256>}, {pipeline_mode = #tpu.pipeline_mode<synchronous>, transform_indices = @transform_2, window_bounds = array<i64: 3, 16, 8>}, {pipeline_mode = #tpu.pipeline_mode<synchronous>, transform_indices = @transform_3, window_bounds = array<i64: 1, 256>}, {transform_indices = @transform_4, window_bounds = array<i64: 1, 16, 128>}]} {
    %c0 = arith.constant 0 : index
    %c0_0 = arith.constant 0 : index
    %c0_1 = arith.constant 0 : index
    %0 = vector.load %arg1[%c0, %c0_0, %c0_1] : memref<1x8x128xbf16, #tpu.memory_space<vmem>>, vector<1x8x128xbf16>
    %1 = vector.shape_cast %0 : vector<1x8x128xbf16> to vector<8x128xbf16>
    %c0_2 = arith.constant 0 : index
    %c0_3 = arith.constant 0 : index
    %2 = vector.load %arg4[%c0_2, %c0_3] : memref<1x256xf32, #tpu.memory_space<vmem>>, vector<1x256xf32>
    %3 = vector.shape_cast %2 : vector<1x256xf32> to vector<1x256xf32>
    %4 = vector.broadcast %3 : vector<1x256xf32> to vector<16x256xf32>
    %c0_4 = arith.constant 0 : index
    %c0_5 = arith.constant 0 : index
    %c0_6 = arith.constant 0 : index
    %5 = vector.load %arg2[%c0_4, %c0_5, %c0_6] : memref<3x128x256xbf16, #tpu.memory_space<vmem>>, vector<1x128x256xbf16>
    %6 = vector.shape_cast %5 : vector<1x128x256xbf16> to vector<128x256xbf16>
    %cst = arith.constant dense<0.000000e+00> : vector<8x256xf32>
    %7 = tpu.matmul %1, %6, %cst {dimension_numbers = #tpu.dot_dimension_numbers<[1], [0], [0], [1], [0, 0, 1, 1], [], []>} : vector<8x128xbf16>, vector<128x256xbf16>, vector<8x256xf32> -> vector<8x256xf32>
    %c0_7 = arith.constant 0 : index
    %c0_8 = arith.constant 0 : index
    %c0_9 = arith.constant 0 : index
    %8 = vector.load %arg3[%c0_7, %c0_8, %c0_9] : memref<3x16x8xbf16, #tpu.memory_space<vmem>>, vector<1x16x8xbf16>
    %9 = vector.shape_cast %8 : vector<1x16x8xbf16> to vector<16x8xbf16>
    %10 = arith.truncf %7 : vector<8x256xf32> to vector<8x256xbf16>
    %cst_10 = arith.constant dense<0.000000e+00> : vector<16x256xf32>
    %11 = tpu.matmul %9, %10, %cst_10 {dimension_numbers = #tpu.dot_dimension_numbers<[1], [0], [0], [1], [0, 0, 1, 1], [], []>} : vector<16x8xbf16>, vector<8x256xbf16>, vector<16x256xf32> -> vector<16x256xf32>
    %12 = arith.addf %4, %11 : vector<16x256xf32>
    %c1 = arith.constant 1 : index
    %c0_11 = arith.constant 0 : index
    %c0_12 = arith.constant 0 : index
    %13 = vector.load %arg2[%c1, %c0_11, %c0_12] : memref<3x128x256xbf16, #tpu.memory_space<vmem>>, vector<1x128x256xbf16>
    %14 = vector.shape_cast %13 : vector<1x128x256xbf16> to vector<128x256xbf16>
    %cst_13 = arith.constant dense<0.000000e+00> : vector<8x256xf32>
    %15 = tpu.matmul %1, %14, %cst_13 {dimension_numbers = #tpu.dot_dimension_numbers<[1], [0], [0], [1], [0, 0, 1, 1], [], []>} : vector<8x128xbf16>, vector<128x256xbf16>, vector<8x256xf32> -> vector<8x256xf32>
    %c1_14 = arith.constant 1 : index
    %c0_15 = arith.constant 0 : index
    %c0_16 = arith.constant 0 : index
    %16 = vector.load %arg3[%c1_14, %c0_15, %c0_16] : memref<3x16x8xbf16, #tpu.memory_space<vmem>>, vector<1x16x8xbf16>
    %17 = vector.shape_cast %16 : vector<1x16x8xbf16> to vector<16x8xbf16>
    %18 = arith.truncf %15 : vector<8x256xf32> to vector<8x256xbf16>
    %cst_17 = arith.constant dense<0.000000e+00> : vector<16x256xf32>
    %19 = tpu.matmul %17, %18, %cst_17 {dimension_numbers = #tpu.dot_dimension_numbers<[1], [0], [0], [1], [0, 0, 1, 1], [], []>} : vector<16x8xbf16>, vector<8x256xbf16>, vector<16x256xf32> -> vector<16x256xf32>
    %20 = arith.addf %12, %19 : vector<16x256xf32>
    %c2 = arith.constant 2 : index
    %c0_18 = arith.constant 0 : index
    %c0_19 = arith.constant 0 : index
    %21 = vector.load %arg2[%c2, %c0_18, %c0_19] : memref<3x128x256xbf16, #tpu.memory_space<vmem>>, vector<1x128x256xbf16>
    %22 = vector.shape_cast %21 : vector<1x128x256xbf16> to vector<128x256xbf16>
    %cst_20 = arith.constant dense<0.000000e+00> : vector<8x256xf32>
    %23 = tpu.matmul %1, %22, %cst_20 {dimension_numbers = #tpu.dot_dimension_numbers<[1], [0], [0], [1], [0, 0, 1, 1], [], []>} : vector<8x128xbf16>, vector<128x256xbf16>, vector<8x256xf32> -> vector<8x256xf32>
    %c2_21 = arith.constant 2 : index
    %c0_22 = arith.constant 0 : index
    %c0_23 = arith.constant 0 : index
    %24 = vector.load %arg3[%c2_21, %c0_22, %c0_23] : memref<3x16x8xbf16, #tpu.memory_space<vmem>>, vector<1x16x8xbf16>
    %25 = vector.shape_cast %24 : vector<1x16x8xbf16> to vector<16x8xbf16>
    %26 = arith.truncf %23 : vector<8x256xf32> to vector<8x256xbf16>
    %cst_24 = arith.constant dense<0.000000e+00> : vector<16x256xf32>
    %27 = tpu.matmul %25, %26, %cst_24 {dimension_numbers = #tpu.dot_dimension_numbers<[1], [0], [0], [1], [0, 0, 1, 1], [], []>} : vector<16x8xbf16>, vector<8x256xbf16>, vector<16x256xf32> -> vector<16x256xf32>
    %28 = arith.addf %20, %27 : vector<16x256xf32>
    %29 = vector.extract_strided_slice %28 {offsets = [0, 0], sizes = [16, 128], strides = [1, 1]} : vector<16x256xf32> to vector<16x128xf32>
    %30 = vector.extract_strided_slice %28 {offsets = [0, 128], sizes = [16, 128], strides = [1, 1]} : vector<16x256xf32> to vector<16x128xf32>
    %31 = arith.negf %30 : vector<16x128xf32>
    %32 = math.exp %31 : vector<16x128xf32>
    %cst_25 = arith.constant 1.000000e+00 : f32
    %33 = vector.broadcast %cst_25 : f32 to vector<16x128xf32>
    %34 = arith.addf %33, %32 : vector<16x128xf32>
    %35 = arith.divf %33, %34 : vector<16x128xf32>
    %36 = arith.mulf %29, %35 : vector<16x128xf32>
    %37 = arith.negf %36 : vector<16x128xf32>
    %38 = math.exp %37 : vector<16x128xf32>
    %cst_26 = arith.constant 1.000000e+00 : f32
    %39 = vector.broadcast %cst_26 : f32 to vector<16x128xf32>
    %40 = arith.addf %39, %38 : vector<16x128xf32>
    %41 = arith.divf %39, %40 : vector<16x128xf32>
    %c0_27 = arith.constant 0 : index
    %c0_28 = arith.constant 0 : index
    %c0_29 = arith.constant 0 : index
    %42 = vector.load %arg5[%c0_27, %c0_28, %c0_29] : memref<1x16x128xf32, #tpu.memory_space<vmem>>, vector<1x16x128xf32>
    %43 = vector.shape_cast %42 : vector<1x16x128xf32> to vector<16x128xf32>
    %44 = vector.shape_cast %41 : vector<16x128xf32> to vector<1x16x128xf32>
    tpu.vector_store %arg5[%c0_27, %c0_28, %c0_29], %44 {strides = array<i32>} : memref<1x16x128xf32, #tpu.memory_space<vmem>>, vector<1x16x128xf32>,
    return
  }
  func.func @transform_0(%arg0: i32) -> (i32, i32, i32) {
    %c0_i32 = arith.constant 0 : i32
    %c0_i32_0 = arith.constant 0 : i32
    %c0_i32_1 = arith.constant 0 : i32
    return %arg0, %c0_i32, %c0_i32_0 : i32, i32, i32
  }
  func.func @transform_1(%arg0: i32) -> (i32, i32, i32) {
    %c0_i32 = arith.constant 0 : i32
    %c0_i32_0 = arith.constant 0 : i32
    %c0_i32_1 = arith.constant 0 : i32
    %c0_i32_2 = arith.constant 0 : i32
    return %c0_i32, %c0_i32_0, %c0_i32_1 : i32, i32, i32
  }
  func.func @transform_2(%arg0: i32) -> (i32, i32, i32) {
    %c0_i32 = arith.constant 0 : i32
    %c0_i32_0 = arith.constant 0 : i32
    %c0_i32_1 = arith.constant 0 : i32
    %c0_i32_2 = arith.constant 0 : i32
    return %c0_i32, %c0_i32_0, %c0_i32_1 : i32, i32, i32
  }
  func.func @transform_3(%arg0: i32) -> (i32, i32) {
    %c0_i32 = arith.constant 0 : i32
    %c0_i32_0 = arith.constant 0 : i32
    %c0_i32_1 = arith.constant 0 : i32
    return %c0_i32, %c0_i32_0 : i32, i32
  }
  func.func @transform_4(%arg0: i32) -> (i32, i32, i32) {
    %c0_i32 = arith.constant 0 : i32
    %c0_i32_0 = arith.constant 0 : i32
    %c0_i32_1 = arith.constant 0 : i32
    return %arg0, %c0_i32, %c0_i32_0 : i32, i32, i32
  }
}

</mosaic_0001>

<bundles_post_ra>
// kernel: _lambda_.3
= control target key start
LH: loop header
LB: loop body
LE: loop exit
PB: predicated region body
PF: predicated region fallthrough
CT: control target
= control target key end

     0   :  { %10 = vsyncpa [#allocation3], 0  ;;  %s788_s0 = inlined_call_operand.hbm [shape: f32[2,32], index: 0, kind: input, shape index: {}]   ;;  %s789_s1 = inlined_call_operand.vmem [shape: bf16[32,1152], index: 1, kind: input, shape index: {}]   ;;  %s790_s2 = inlined_call_operand.vmem [shape: f32[1,1152], index: 2, kind: input, shape index: {}]   ;;  %s791_s3 = inlined_call_operand.hbm [shape: f32[2,10], index: 3, kind: output, shape index: {0}]   ;;  %s792_s4 = inlined_call_operand.vmem [shape: bf16[2,512], index: 4, kind: output, shape index: {1}]  }
   0x1   :  { %11 = vsyncpa [#allocation4], 0  ;;  %s637_s15 = smov [#allocation2]   ;;  %s589_s19 = scalar_lea.hbm %s788_s0, 32 }
   0x2   :  { %s18_s16 = sshll.u32 %s637_s15, 4  ;;  %p590_p0 = scmp.ne.s32.totalorder %s788_s0, %s589_s19  ;;  %s19_s16 = int_to_ptr.vmem [resolvable:$true] %s18_s16 }
   0x3   :  { %p593_p1 = scmp.lt.u32.totalorder %s589_s19, %s788_s0 }
   0x5   :  { %p595_p2 = pnand %p593_p1, %p590_p0 }
   0x7   :  { %598 = shalt.err (!%p595_p2)
}
   0x8   :  { %s599_s24 = scalar_lea.vmem %s19_s16, 32  ;;  %p604_p4 = scmp.lt.s32.totalorder %s19_s16, %s19_s16 }
   0x9   :  { %p600_p3 = scmp.ne.s32.totalorder %s19_s16, %s599_s24  ;;  %p605_p5 = scmp.lt.s32.totalorder %s599_s24, %s599_s24 }
   0xb   :  { %p606_p6 = por %p605_p5, %p604_p4 }
   0xd   :  { %p607_p7 = pnand %p606_p6, %p600_p3 }
   0xf   :  { %610 = shalt.err (!%p607_p7)
}
  0x10   :  { %21 = dma.hbm_to_vmem [thread:$0]  %s788_s0, 32, %s19_s16, [#allocation3]  }
  0x11   :  { %633 = dma.done.wait [#allocation3], 32  }
  0x12   :  { %634 = vsyncadd [#allocation3], 4294967264  ;;  %v638_v0 = vmov 0   ;;  %v543_v1 = vld [vmem:[%s789_s1 + $0x4] ss:$36 sps:$4 sm:$0xff]   ;;  %vm193_vm0 = vcmask 261120   ;;  %v56_v22 = vlaneseq }
  0x13   :  { %229 = vmatprep.mubr.bf16.mxu0 %v638_v0  ;;  %270 = vmatprep.mubr.bf16.mxu1 %v638_v0  ;;  %v545_v2 = vld [vmem:[%s789_s1] ss:$36 sps:$4 sm:$0xff]   ;;  %v546_v3 = vld [vmem:[%s789_s1 + $0xc] ss:$36 sps:$4 sm:$0xff]   ;;  %v552_v7 = vld [vmem:[%s789_s1 + $0x54] ss:$36 sps:$4 sm:$0xff]  }
  0x14   :  { %197 = vmatprep.subr.bf16.mxu0 %v543_v1  ;;  %v548_v4 = vld [vmem:[%s789_s1 + $0x8] ss:$36 sps:$4 sm:$0xff]   ;;  %238 = vmatprep.subr.bf16.mxu1 %v546_v3  ;;  %v554_v8 = vld [vmem:[%s789_s1 + $0x50] ss:$36 sps:$4 sm:$0xff]   ;;  %v30_v9 = vld [vmem:[#allocation2] sm:$0x3] }
  0x15   :  { %198 = vmatpush1.bf16.msra.mxu0 %v545_v2  ;;  %v549_v5 = vld [vmem:[%s789_s1 + $0x4c] ss:$36 sps:$4 sm:$0xff]   ;;  %239 = vmatpush1.bf16.msra.mxu1 %v548_v4  ;;  %v31_v10 = vpack.c.bf16 %v30_v9, %v30_v9  ;;  %v557_v11 = vld [vmem:[%s789_s1 + $0x14] ss:$36 sps:$4 sm:$0xff]   ;;  %v560_v13 = vld [vmem:[%s789_s1 + $0x1c] ss:$36 sps:$4 sm:$0xff]  }
  0x16   :  { %v551_v6 = vld [vmem:[%s789_s1 + $0x48] ss:$36 sps:$4 sm:$0xff]   ;;  %199 = vmatprep.subr.bf16.mxu0 %v549_v5  ;;  %240 = vmatprep.subr.bf16.mxu1 %v552_v7  ;;  %v555_v12 = vld [vmem:[%s789_s1 + $0x10] ss:$36 sps:$4 sm:$0xff]   ;;  %v558_v14 = vld [vmem:[%s789_s1 + $0x18] ss:$36 sps:$4 sm:$0xff]  }
  0x17   :  { %v563_v15 = vld [vmem:[%s789_s1 + $0x5c] ss:$36 sps:$4 sm:$0xff]   ;;  %v566_v16 = vld [vmem:[%s789_s1 + $0x64] ss:$36 sps:$4 sm:$0xff]   ;;  %v639_v20 = vmov 0.0   ;;  %vm640_vm1 = vmmov 0  }
  0x18   :  { %v561_v17 = vld [vmem:[%s789_s1 + $0x58] ss:$36 sps:$4 sm:$0xff]   ;;  %v564_v18 = vld [vmem:[%s789_s1 + $0x60] ss:$36 sps:$4 sm:$0xff]   ;;  %v568_v21 = vld [vmem:[%s789_s1 + $0x68] ss:$36 sps:$4 sm:$0xff]  }
  0x19   :  { %200 = vmatpush1.bf16.msra.mxu0 %v551_v6  ;;  %241 = vmatpush1.bf16.msra.mxu1 %v554_v8  ;;  %v567_v19 = vld [vmem:[%s789_s1 + $0x20] ss:$36 sps:$4 sm:$0xff]   ;;  %v739_v23 = vshrl.u32 %v56_v22, 7  ;;  %vm401_vm2 = vcmask 74752   ;;  %v495_v57 = vld [vmem:[%s790_s2 + $0x8] ss:$0 sm:$0xff] }
  0x1a   :  { %279 = vmatprep.subr.bf16.mxu0 %v557_v11  ;;  %320 = vmatprep.subr.bf16.mxu1 %v560_v13  ;;  %v745_v25 = vld [vmem:[%s790_s2] sm:$0xff]  ;;  %s642_s13 = smov [#allocation5]  }
  0x1b   :  { %v58_v24 = vsub.s32 0, %v739_v23  ;;  %v78_v32 = vsub.s32 5, %v739_v23  ;;  %v82_v36 = vsub.s32 6, %v739_v23  ;;  %v86_v38 = vsub.s32 7, %v739_v23  ;;  %s482_s14 = sshll.u32 %s642_s13, 4  ;;  %s483_s14 = int_to_ptr.vmem [resolvable:$true] %s482_s14 }
  0x1c   :  { %514 = vmatmul.mubr.msk.bf16.vlgmr.msra.gmra.mrb[0].mxu0 %vm193_vm0, %v31_v10  ;;  %515 = vmatmul.mubr.msk.bf16.vlgmr.msra.gmra.mrb[0].mxu1 %vm193_vm0, %v31_v10  ;;  %v66_v5 = vsub.s32 2, %v739_v23  ;;  %v62_v7 = vsub.s32 1, %v739_v23  ;;  %v70_v8 = vsub.s32 3, %v739_v23  ;;  %s611_s15 = scalar_lea.vmem %s483_s14, 32  ;;  %p616_p9 = scmp.lt.s32.totalorder %s483_s14, %s483_s14 }
  0x1d   :  { %280 = vmatpush1.bf16.msra.mxu0 %v555_v12  ;;  %311 = vmatprep.mubr.bf16.mxu0 %v638_v0  ;;  %v59_v26 = vrot.slane %v745_v25, %v58_v24  ;;  %v79_v40 = vrot.slane %v745_v25, %v78_v32  ;;  %v83_v41 = vrot.slane %v745_v25, %v82_v36  ;;  %p612_p8 = scmp.ne.s32.totalorder %s483_s14, %s611_s15  ;;  %p617_p10 = scmp.lt.s32.totalorder %s611_s15, %s611_s15 }
  0x1e   :  { %281 = vmatprep.subr.bf16.mxu0 %v563_v15  ;;  %321 = vmatpush1.bf16.msra.mxu1 %v558_v14  ;;  %v87_v43 = vrot.slane %v745_v25, %v86_v38  ;;  %v63_v11 = vrot.slane %v745_v25, %v62_v7  ;;  %v71_v12 = vrot.slane %v745_v25, %v70_v8  ;;  %v74_v14 = vsub.s32 4, %v739_v23 }
  0x1f   :  { %352 = vmatprep.mubr.bf16.mxu1 %v638_v0  ;;  %322 = vmatprep.subr.bf16.mxu1 %v566_v16  ;;  %p618_p11 = por %p617_p10, %p616_p9 }
  0x21   :  { %282 = vmatpush1.bf16.msra.mxu0 %v561_v17  ;;  %p619_p12 = pnand %p618_p11, %p612_p8 }
  0x22   :  { %529 = vmatprep.subr.bf16.mxu0 %v639_v20  ;;  %323 = vmatpush1.bf16.msra.mxu1 %v564_v18 }
  0x24   :  { %516 = vmatmul.mubr.msk.bf16.vlgmr.msra.gmra.mrb[4].mxu0 %vm193_vm0, %v31_v10 }
  0x25   :  { %530 = vmatpush3.bf16.msra.mxu0 %v567_v19  ;;  %533 = vmatprep.mubr.msk.bf16.mxu0 %vm640_vm1, %v639_v20  ;;  %v75_v19 = vrot.slane %v745_v25, %v74_v14 }
  0x26   :  { %517 = vmatmul.mubr.msk.bf16.vlgmr.msra.gmra.mrb[4].mxu1 %vm193_vm0, %v31_v10  ;;  %531 = vmatprep.subr.bf16.mxu0 %v639_v20  ;;  %v641_v20 = vmov 1966171168  }
  0x29   :  { %532 = vmatpush3.bf16.msra.mxu0 %v568_v21  ;;  %v453_v21 = vunpack.c.l.s4 %v641_v20 }
  0x2c   :  { %534 = vmatmul.mubr.msk.bf16.vlgmr.msra.gmra.mrb[8].mxu0 %vm193_vm0, %v31_v10  ;;  %v67_v10 = vrot.slane %v745_v25, %v66_v5 }
  0xef   :  { %v231_v27 = vpop.f32.mrb[0].mxu0  ;;  %v272_v31 = vpop.f32.mrb[0].mxu1 }
  0xf0   :  { %v748_v28 = vadd.f32 %v231_v27, %v59_v26  ;;  %v233_v29 = vpop.f32.mrb[1].mxu0  ;;  %v274_v35 = vpop.f32.mrb[1].mxu1  ;;  %v273_v15 = vadd.f32 %v272_v31, %v67_v10 }
  0xf1   :  { %v235_v30 = vpop.f32.mrb[2].mxu0  ;;  %v276_v37 = vpop.f32.mrb[2].mxu1  ;;  %v234_v16 = vadd.f32 %v233_v29, %v63_v11  ;;  %v275_v17 = vadd.f32 %v274_v35, %v71_v12 }
  0xf2   :  { %v236_v33 = vpop.f32.mrb[3].mxu0  ;;  %v402_v34 = vsel %vm401_vm2, %v748_v28, -inf  ;;  %v277_v39 = vpop.f32.mrb[3].mxu1 }
  0xf3   :  { %403 = vmax.xlane.f32.xlu0 %v402_v34  ;;  %v454_v34 = vunpack.c.0.s8 %v453_v21 }
  0xf5   :  { %v457_v37 = vsub.s32 %v454_v34, %v739_v23 }
  0xf7   :  { %v313_v42 = vpop.f32.mrb[4].mxu0 }
  0xf8   :  { %v315_v44 = vpop.f32.mrb[5].mxu0  ;;  %v314_v32 = vadd.f32 %v313_v42, %v75_v19 }
  0xf9   :  { %v316_v45 = vadd.f32 %v315_v44, %v79_v40  ;;  %v354_v46 = vpop.f32.mrb[4].mxu1  ;;  %v317_v47 = vpop.f32.mrb[6].mxu0 }
  0xfa   :  { %v355_v48 = vadd.f32 %v354_v46, %v83_v41  ;;  %v318_v49 = vpop.f32.mrb[7].mxu0  ;;  %v356_v50 = vpop.f32.mrb[5].mxu1 }
  0xfb   :  { %v519_v51 = vmul.f32 -1.442695, %v316_v45  ;;  %v357_v52 = vadd.f32 %v356_v50, %v87_v43  ;;  %v358_v53 = vpop.f32.mrb[6].mxu1 }
  0xfc   :  { %v520_v54 = vmul.f32 -1.442695, %v355_v48  ;;  %v359_v55 = vpop.f32.mrb[7].mxu1 }
  0xfd   :  { %569 = vpow2.f32 %v519_v51  ;;  %v521_v56 = vmul.f32 -1.442695, %v357_v52 }
  0xfe   :  { %571 = vpow2.f32 %v520_v54 }
  0xff   :  { %573 = vpow2.f32 %v521_v56  ;;  %v395_v58 = vpop.f32.mrb[8].mxu0 }
 0x100   :  { %v396_v59 = vadd.f32 %v495_v57, %v395_v58  ;;  %v535_v60 = vpop.f32.mrb[9].mxu0 }
 0x101   :  { %v398_v61 = vpop.f32.mrb[10].mxu0 }
 0x102   :  { %v522_v62 = vmul.f32 -1.442695, %v396_v59  ;;  %v536_v63 = vpop.f32.mrb[11].mxu0 }
 0x104   :  { %575 = vpow2.f32 %v522_v62 }
 0x107   :  { %v570_v0 = vpop.eup %569 }
 0x108   :  { %v572_v1 = vpop.eup %571  ;;  %v426_v2 = vadd.f32 1.0, %v570_v0 }
 0x109   :  { %v574_v3 = vpop.eup %573  ;;  %v427_v4 = vadd.f32 1.0, %v572_v1 }
 0x10a   :  { %577 = vrcp.f32 %v426_v2  ;;  %v428_v6 = vadd.f32 1.0, %v574_v3 }
 0x10b   :  { %579 = vrcp.f32 %v427_v4 }
 0x10c   :  { %581 = vrcp.f32 %v428_v6 }
 0x10e   :  { %v576_v9 = vpop.eup %575 }
 0x10f   :  { %v429_v13 = vadd.f32 1.0, %v576_v9 }
 0x111   :  { %583 = vrcp.f32 %v429_v13 }
 0x114   :  { %v578_v18 = vpop.eup %577 }
 0x115   :  { %v580_v22 = vpop.eup %579  ;;  %v438_v24 = vmul.f32 %v578_v18, %v234_v16 }
 0x116   :  { %v582_v26 = vpop.eup %581  ;;  %v439_v27 = vmul.f32 %v580_v22, %v273_v15 }
 0x117   :  { %v440_v30 = vmul.f32 %v582_v26, %v275_v17 }
 0x118   :  { %v523_v33 = vpack.c.bf16 %v439_v27, %v438_v24 }
 0x11a   :  { %v458_v29 = vrot.slane %v523_v33, %v457_v37 }
 0x11b   :  { %v584_v36 = vpop.eup %583 }
 0x11c   :  { %v441_v38 = vmul.f32 %v584_v36, %v314_v32 }
 0x11e   :  { %v524_v31 = vpack.c.bf16 %v441_v38, %v440_v30 }
 0x120   :  { %v465_v35 = vrot.slane %v524_v31, %v457_v37 }
 0x122   :  { %v466_v39 = vcombine.low %v458_v29, %v465_v35 }
 0x124   :  { %525 = vst.sshfl [vmem:[%s792_s4] sm:$0x55 pattern:$0x73625140] %v466_v39 }
 0x180   :  { %v404_v25 = vpop.xlane.xlu0 %403 }
 0x181   :  { %v405_v40 = vsub.f32 %v748_v28, %v404_v25 }
 0x183   :  { %v406_v41 = vmul.f32 1.442695, %v405_v40 }
 0x185   :  { %585 = vpow2.f32 %v406_v41 }
 0x18f   :  { %v586_v42 = vpop.eup %585 }
 0x190   :  { %v408_v43 = vsel %vm401_vm2, %v586_v42, 0.0 }
 0x191   :  { %409 = vadd.xlane.f32.xlu0 %v408_v43 }
 0x21e   :  { %v410_v44 = vpop.xlane.xlu0 %409 }
 0x21f   :  { %587 = vrcp.f32 %v410_v44 }
 0x229   :  { %v588_v23 = vpop.eup %587 }
 0x22a   :  { %v412_v45 = vmul.f32 %v588_v23, %v586_v42 }
 0x22c   :  { %413 = vst.msk [vmem:[#allocation5] sm:$0x3] %vm401_vm2, %v412_v45 }
 0x22d   :  { %622 = shalt.err (!%p619_p12)
}
 0x22e   :  { %s623_s17 = scalar_lea.hbm %s791_s3, 32 }
 0x22f   :  { %p624_p13 = scmp.ne.s32.totalorder %s791_s3, %s623_s17  ;;  %p627_p0 = scmp.lt.u32.totalorder %s623_s17, %s791_s3 }
 0x231   :  { %p629_p1 = pnand %p627_p0, %p624_p13 }
 0x233   :  { %632 = shalt.err (!%p629_p1)
}
 0x234   :  { %485 = dma.vmem_to_hbm [thread:$0]  %s483_s14, 32, %s791_s3, [#allocation4]  }
 0x235   :  { %635 = dma.done.wait [#allocation4], 32  }
 0x236   :  { %636 = vsyncadd [#allocation4], 4294967264 }
 0x237   :  { %493 = vsyncpa [#allocation3], 1 }
 0x238   :  { %494 = vsyncpa [#allocation4], 1 }

// kernel: _lambda_.4
= control target key start
LH: loop header
LB: loop body
LE: loop exit
PB: predicated region body
PF: predicated region fallthrough
CT: control target
= control target key end

     0   :  { %s1078_s15 = smov 0   ;;  %s1279_s0 = inlined_call_operand.vmem [shape: bf16[2,4,128], index: 0, kind: input, shape index: {}]   ;;  %s1280_s1 = inlined_call_operand.vmem [shape: bf16[3,128,256], index: 1, kind: input, shape index: {}]   ;;  %s1281_s2 = inlined_call_operand.vmem [shape: bf16[3,8,4], index: 2, kind: input, shape index: {}]   ;;  %s1282_s3 = inlined_call_operand.vmem [shape: f32[1,256], index: 3, kind: input, shape index: {}]   ;;  %s1283_s4 = inlined_call_operand.vmem [shape: bf16[2,8,128], index: 4, kind: output, shape index: {}]  }
   0x1 LB: > { %s851_s16 = sadd.s32 4294967295, %s1050_s15   ;;  %p855_p0 = scmp.ge.s32.totalorder %s1050_s15, 1  ;;  %s1050_s15 = sphi %s1078_s15, %s14_s15  }
   0x2   : > { %p161_p1 = scmp.lt.s32.totalorder %s1050_s15, 3 }
   0x4   : > { %p162_p2 = pnand %p855_p0, %p161_p1 }
   0x5   : > { %v968_v0 = vld [vmem:[%s1280_s1 + $0x4] ss:$8 sps:$4 sm:$0xff] (!%p162_p2)   ;;  %v970_v1 = vld [vmem:[%s1280_s1] ss:$8 sps:$4 sm:$0xff] (!%p162_p2)   ;;  %v1052_v2 = vmov (!%p162_p2), 0   ;;  %p185_p3 = scmp.lt.s32.totalorder (!%p162_p2), %s851_s16, 1 }
   0x6   : > { %165 = sbr.rel (%p162_p2) target bundleno = 767 (0x2ff), region = 36  ;;  %335 = vmatprep.mubr.bf16.mxu0 (!%p162_p2), %v1052_v2  ;;  %390 = vmatprep.mubr.bf16.mxu1 (!%p162_p2), %v1052_v2  ;;  %v971_v3 = vld [vmem:[%s1280_s1 + $0x14] ss:$8 sps:$4 sm:$0xff] (!%p162_p2)   ;;  %v973_v4 = vld [vmem:[%s1280_s1 + $0x10] ss:$8 sps:$4 sm:$0xff] (!%p162_p2)   ;;  %vm351_vm0 = vcmask (!%p162_p2), 1041408  }
   0x7   : > { %303 = vmatprep.subr.bf16.mxu0 (!%p162_p2), %v968_v0  ;;  %v974_v5 = vld [vmem:[%s1280_s1 + $0x24] ss:$8 sps:$4 sm:$0xff] (!%p162_p2)   ;;  %v976_v6 = vld [vmem:[%s1280_s1 + $0x20] ss:$8 sps:$4 sm:$0xff] (!%p162_p2)   ;;  %v977_v7 = vld [vmem:[%s1280_s1 + $0x34] ss:$8 sps:$4 sm:$0xff] (!%p162_p2)  }
   0x8   : > { %304 = vmatpush1.bf16.msra.mxu0 (!%p162_p2), %v970_v1  ;;  %v979_v8 = vld [vmem:[%s1280_s1 + $0x30] ss:$8 sps:$4 sm:$0xff] (!%p162_p2)   ;;  %v980_v9 = vld [vmem:[%s1280_s1 + $0x44] ss:$8 sps:$4 sm:$0xff] (!%p162_p2)   ;;  %v982_v10 = vld [vmem:[%s1280_s1 + $0x40] ss:$8 sps:$4 sm:$0xff] (!%p162_p2)  }
   0x9   : > { %305 = vmatprep.subr.bf16.mxu0 (!%p162_p2), %v971_v3  ;;  %v983_v11 = vld [vmem:[%s1280_s1 + $0x54] ss:$8 sps:$4 sm:$0xff] (!%p162_p2)   ;;  %v985_v12 = vld [vmem:[%s1280_s1 + $0x50] ss:$8 sps:$4 sm:$0xff] (!%p162_p2)   ;;  %v986_v13 = vld [vmem:[%s1280_s1 + $0x64] ss:$8 sps:$4 sm:$0xff] (!%p162_p2)  }
   0xa   : > { %v988_v14 = vld [vmem:[%s1280_s1 + $0x60] ss:$8 sps:$4 sm:$0xff] (!%p162_p2)   ;;  %v989_v15 = vld [vmem:[%s1280_s1 + $0x74] ss:$8 sps:$4 sm:$0xff] (!%p162_p2)   ;;  %v991_v16 = vld [vmem:[%s1280_s1 + $0x70] ss:$8 sps:$4 sm:$0xff] (!%p162_p2)  }
   0xb   : > { %v998_v18 = vld [vmem:[%s1280_s1 + $0x100] ss:$8 sps:$4 sm:$0xff] (!%p162_p2)   ;;  %v1000_v19 = vld [vmem:[%s1280_s1 + $0x104] ss:$8 sps:$4 sm:$0xff] (!%p162_p2)   ;;  %v1004_v20 = vld [vmem:[%s1280_s1 + $0x110] ss:$8 sps:$4 sm:$0xff] (!%p162_p2)  }
   0xc   : > { %306 = vmatpush1.bf16.msra.mxu0 (!%p162_p2), %v973_v4  ;;  %v1006_v21 = vld [vmem:[%s1280_s1 + $0x114] ss:$8 sps:$4 sm:$0xff] (!%p162_p2)   ;;  %v1010_v22 = vld [vmem:[%s1280_s1 + $0x120] ss:$8 sps:$4 sm:$0xff] (!%p162_p2)   ;;  %v1012_v23 = vld [vmem:[%s1280_s1 + $0x124] ss:$8 sps:$4 sm:$0xff] (!%p162_p2)  }
   0xd   : > { %307 = vmatprep.subr.bf16.mxu0 %v974_v5  ;;  %s1285_s16 = smov (!%p185_p3, %s851_s16), 1  ;;  %v1016_v24 = vld [vmem:[%s1280_s1 + $0x130] ss:$8 sps:$4 sm:$0xff]   ;;  %v1018_v25 = vld [vmem:[%s1280_s1 + $0x134] ss:$8 sps:$4 sm:$0xff]   ;;  %vm347_vm1 = vcmask 31744  }
   0xe   : > { %s856_s23 = sshll.u32 %s1285_s16, 1  ;;  %v1022_v26 = vld [vmem:[%s1280_s1 + $0x140] ss:$8 sps:$4 sm:$0xff]   ;;  %v1024_v27 = vld [vmem:[%s1280_s1 + $0x144] ss:$8 sps:$4 sm:$0xff]   ;;  %s857_s29 = sshll.u32 %s1285_s16, 2 }
   0xf   : > { %s188_s28 = scalar_lea.vmem %s1279_s0, %s856_s23  ;;  %v1028_v28 = vld [vmem:[%s1280_s1 + $0x150] ss:$8 sps:$4 sm:$0xff]   ;;  %v1030_v29 = vld [vmem:[%s1280_s1 + $0x154] ss:$8 sps:$4 sm:$0xff]   ;;  %v1034_v30 = vld [vmem:[%s1280_s1 + $0x160] ss:$8 sps:$4 sm:$0xff]   ;;  %s192_s6 = scalar_lea.vmem %s1283_s4, %s857_s29 }
  0x10   : > { %308 = vmatpush1.bf16.msra.mxu0 %v976_v6  ;;  %v1146_v17 = vld [vmem:[%s188_s28] sm:$0x3]  ;;  %v1036_v31 = vld [vmem:[%s1280_s1 + $0x164] ss:$8 sps:$4 sm:$0xff]   ;;  %v1037_v32 = vld [vmem:[%s1280_s1 + $0x170] ss:$8 sps:$4 sm:$0xff]  }
  0x11   : > { %309 = vmatprep.subr.bf16.mxu0 %v977_v7  ;;  %v1039_v33 = vld [vmem:[%s1280_s1 + $0x174] ss:$8 sps:$4 sm:$0xff]   ;;  %v994_v39 = vld [vmem:[%s1280_s1 + $0x84] ss:$8 sps:$4 sm:$0xff]   ;;  %v992_v42 = vld [vmem:[%s1280_s1 + $0x80] ss:$8 sps:$4 sm:$0xff]  }
  0x12   : > { %v344_v43 = vld [vmem:[%s1281_s2] sm:$0xf]  ;;  %v997_v44 = vld [vmem:[%s1280_s1 + $0x94] ss:$8 sps:$4 sm:$0xff]   ;;  %v995_v45 = vld [vmem:[%s1280_s1 + $0x90] ss:$8 sps:$4 sm:$0xff]  }
  0x13   : > { %v1003_v46 = vld [vmem:[%s1280_s1 + $0xa4] ss:$8 sps:$4 sm:$0xff]   ;;  %v1001_v47 = vld [vmem:[%s1280_s1 + $0xa0] ss:$8 sps:$4 sm:$0xff]   ;;  %v1009_v48 = vld [vmem:[%s1280_s1 + $0xb4] ss:$8 sps:$4 sm:$0xff]  }
  0x14   : > { %310 = vmatpush1.bf16.msra.mxu0 %v979_v8  ;;  %v1007_v49 = vld [vmem:[%s1280_s1 + $0xb0] ss:$8 sps:$4 sm:$0xff]   ;;  %v1015_v50 = vld [vmem:[%s1280_s1 + $0xc4] ss:$8 sps:$4 sm:$0xff]   ;;  %v1013_v51 = vld [vmem:[%s1280_s1 + $0xc0] ss:$8 sps:$4 sm:$0xff]  }
  0x15   : > { %311 = vmatprep.subr.bf16.mxu0 %v980_v9  ;;  %v1021_v52 = vld [vmem:[%s1280_s1 + $0xd4] ss:$8 sps:$4 sm:$0xff]   ;;  %v1019_v53 = vld [vmem:[%s1280_s1 + $0xd0] ss:$8 sps:$4 sm:$0xff]   ;;  %v1027_v54 = vld [vmem:[%s1280_s1 + $0xe4] ss:$8 sps:$4 sm:$0xff]  }
  0x16   : > { %v1025_v55 = vld [vmem:[%s1280_s1 + $0xe0] ss:$8 sps:$4 sm:$0xff]   ;;  %v1033_v56 = vld [vmem:[%s1280_s1 + $0xf4] ss:$8 sps:$4 sm:$0xff]   ;;  %v1031_v57 = vld [vmem:[%s1280_s1 + $0xf0] ss:$8 sps:$4 sm:$0xff]  }
  0x17   : > { %v908_v8 = vld [vmem:[%s1281_s2 + $0x4] sm:$0xf] }
  0x18   : > { %312 = vmatpush1.bf16.msra.mxu0 %v982_v10  ;;  %v943_v10 = vld [vmem:[%s1281_s2 + $0x8] sm:$0xf] }
  0x19   : > { %313 = vmatprep.subr.bf16.mxu0 %v983_v11  ;;  %v197_v11 = vlaneseq }
  0x1c   : > { %314 = vmatpush1.bf16.msra.mxu0 %v985_v12  ;;  %v198_v12 = vshrl.u32 %v197_v11, 7 }
  0x1d   : > { %315 = vmatprep.subr.bf16.mxu0 %v986_v13 }
  0x1e   : > { %v203_v13 = vsub.s32 1, %v198_v12 }
  0x20   : > { %316 = vmatpush1.bf16.msra.mxu0 %v988_v14  ;;  %v195_v14 = vld [vmem:[%s1282_s3] sm:$0x3] }
  0x21   : > { %317 = vmatprep.subr.bf16.mxu0 %v989_v15  ;;  %v204_v15 = vrot.slane %v195_v14, %v203_v13 }
  0x24   : > { %318 = vmatpush1.bf16.msra.mxu0 %v991_v16 }
  0x25   : > { %692 = vmatprep.subr.bf16.mxu0 %v1000_v19 }
  0x27   : > { %336 = vmatmul.mubr.bf16.vlgmr.msra.gmra.mrb[0].mxu0 %v1146_v17 }
  0x28   : > { %724 = vmatprep.mubr.bf16.mxu0 %v1052_v2  ;;  %693 = vmatpush1.bf16.msra.mxu0 %v998_v18 }
  0x29   : > { %694 = vmatprep.subr.bf16.mxu0 %v1006_v21 }
  0x2c   : > { %695 = vmatpush1.bf16.msra.mxu0 %v1004_v20 }
  0x2d   : > { %696 = vmatprep.subr.bf16.mxu0 %v1012_v23  ;;  %v199_v23 = vsub.s32 0, %v198_v12 }
  0x30   : > { %697 = vmatpush1.bf16.msra.mxu0 %v1010_v22 }
  0x31   : > { %698 = vmatprep.subr.bf16.mxu0 %v1018_v25 }
  0x34   : > { %699 = vmatpush1.bf16.msra.mxu0 %v1016_v24  ;;  %v200_v24 = vrot.slane %v195_v14, %v199_v23 }
  0x35   : > { %700 = vmatprep.subr.bf16.mxu0 %v1024_v27 }
  0x38   : > { %701 = vmatpush1.bf16.msra.mxu0 %v1022_v26 }
  0x39   : > { %702 = vmatprep.subr.bf16.mxu0 %v1030_v29 }
  0x3c   : > { %703 = vmatpush1.bf16.msra.mxu0 %v1028_v28 }
  0x3d   : > { %704 = vmatprep.subr.bf16.mxu0 %v1036_v31 }
  0x40   : > { %705 = vmatpush1.bf16.msra.mxu0 %v1034_v30 }
  0x41   : > { %706 = vmatprep.subr.bf16.mxu0 %v1039_v33 }
  0x44   : > { %707 = vmatpush1.bf16.msra.mxu0 %v1037_v32 }
  0x47   : > { %725 = vmatmul.mubr.bf16.vlgmr.msra.gmra.mrb[4].mxu0 %v1146_v17 }
  0xfa   : > { %v337_v34 = vpop.f32.mrb[0].mxu0 }
  0xfb   : > { %v345_v35 = vpack.c.bf16 %v337_v34, %v337_v34  ;;  %v339_v36 = vpop.f32.mrb[1].mxu0 }
  0xfc   : > { %v346_v37 = vpack.c.bf16 %v339_v36, %v339_v36  ;;  %v341_v38 = vpop.f32.mrb[2].mxu0 }
  0xfd   : > { %v342_v40 = vpop.f32.mrb[3].mxu0  ;;  %v353_v41 = vsel %vm351_vm0, %v345_v35, 0 }
  0xfe   : > { %874 = vmatprep.subr.msk.bf16.mxu1 %vm351_vm0, %v346_v37 }
  0xff   : > { %359 = vmatpush1.bf16.msra.mxu1 %v353_v41 }
 0x100   : > { %498 = vmatprep.subr.bf16.mxu1 %v994_v39 }
 0x102   : > { %875 = vmatmul.mubr.msk.bf16.vlgmr.msra.gmra.mrb[0].mxu1 %vm347_vm1, %v344_v43 }
 0x103   : > { %499 = vmatpush1.bf16.msra.mxu1 %v992_v42  ;;  %530 = vmatprep.mubr.bf16.mxu1 %v1052_v2 }
 0x104   : > { %500 = vmatprep.subr.bf16.mxu1 %v997_v44 }
 0x107   : > { %501 = vmatpush1.bf16.msra.mxu1 %v995_v45 }
 0x108   : > { %502 = vmatprep.subr.bf16.mxu1 %v1003_v46 }
 0x10b   : > { %503 = vmatpush1.bf16.msra.mxu1 %v1001_v47 }
 0x10c   : > { %504 = vmatprep.subr.bf16.mxu1 %v1009_v48 }
 0x10f   : > { %505 = vmatpush1.bf16.msra.mxu1 %v1007_v49 }
 0x110   : > { %506 = vmatprep.subr.bf16.mxu1 %v1015_v50 }
 0x113   : > { %507 = vmatpush1.bf16.msra.mxu1 %v1013_v51 }
 0x114   : > { %508 = vmatprep.subr.bf16.mxu1 %v1021_v52 }
 0x117   : > { %509 = vmatpush1.bf16.msra.mxu1 %v1019_v53 }
 0x118   : > { %510 = vmatprep.subr.bf16.mxu1 %v1027_v54 }
 0x11a   : > { %v726_v58 = vpop.f32.mrb[4].mxu0 }
 0x11b   : > { %511 = vmatpush1.bf16.msra.mxu1 %v1025_v55  ;;  %v728_v59 = vpop.f32.mrb[5].mxu0  ;;  %v735_v4 = vpack.c.bf16 %v726_v58, %v726_v58 }
 0x11c   : > { %512 = vmatprep.subr.bf16.mxu1 %v1033_v56  ;;  %v730_v60 = vpop.f32.mrb[6].mxu0  ;;  %v736_v5 = vpack.c.bf16 %v728_v59, %v728_v59 }
 0x11d   : > { %v731_v61 = vpop.f32.mrb[7].mxu0  ;;  %v741_v9 = vsel %vm351_vm0, %v735_v4, 0 }
 0x11f   : > { %513 = vmatpush1.bf16.msra.mxu1 %v1031_v57 }
 0x122   : > { %531 = vmatmul.mubr.bf16.vlgmr.msra.gmra.mrb[4].mxu1 %v1146_v17 }
 0x123   : > { %584 = vmatprep.mubr.bf16.mxu1 %v1052_v2 }
 0x1f5   : > { %v532_v62 = vpop.f32.mrb[4].mxu1 }
 0x1f6   : > { %v541_v63 = vpack.c.bf16 %v532_v62, %v532_v62  ;;  %v534_v0 = vpop.f32.mrb[5].mxu1 }
 0x1f7   : > { %v542_v1 = vpack.c.bf16 %v534_v0, %v534_v0  ;;  %v536_v3 = vpop.f32.mrb[6].mxu1 }
 0x1f8   : > { %v547_v6 = vsel %vm351_vm0, %v541_v63, 0  ;;  %v537_v7 = vpop.f32.mrb[7].mxu1 }
 0x1f9   : > { %909 = vmatprep.subr.msk.bf16.mxu1 %vm351_vm0, %v542_v1 }
 0x1fa   : > { %553 = vmatpush1.bf16.msra.mxu1 %v547_v6 }
 0x1fb   : > { %944 = vmatprep.subr.msk.bf16.mxu1 %vm351_vm0, %v736_v5 }
 0x1fd   : > { %910 = vmatmul.mubr.msk.bf16.vlgmr.msra.gmra.mrb[0].mxu1 %vm347_vm1, %v908_v8 }
 0x1fe   : > { %747 = vmatpush1.bf16.msra.mxu1 %v741_v9  ;;  %778 = vmatprep.mubr.bf16.mxu1 %v1052_v2 }
 0x209   : > { %945 = vmatmul.mubr.msk.bf16.vlgmr.msra.gmra.mrb[0].mxu1 %vm347_vm1, %v943_v10 }
 0x2dc   : > { %v780_v16 = vpop.f32.mrb[0].mxu1 }
 0x2dd   : > { %v782_v17 = vpop.f32.mrb[1].mxu1  ;;  %v949_v25 = vadd.f32 %v780_v16, %v200_v24 }
 0x2de   : > { %v950_v18 = vadd.f32 %v782_v17, %v204_v15  ;;  %v784_v19 = vpop.f32.mrb[2].mxu1 }
 0x2df   : > { %v785_v2 = vpop.f32.mrb[3].mxu1 }
 0x2e0   : > { %v946_v20 = vmul.f32 -1.442695, %v950_v18 }
 0x2e2   : > { %1040 = vpow2.f32 %v946_v20 }
 0x2ec   : > { %v1041_v21 = vpop.eup %1040 }
 0x2ed   : > { %v792_v22 = vadd.f32 1.0, %v1041_v21 }
 0x2ef   : > { %1042 = vrcp.f32 %v792_v22 }
 0x2f9   : > { %v1043_v26 = vpop.eup %1042 }
 0x2fa   : > { %v795_v27 = vmul.f32 %v1043_v26, %v949_v25 }
 0x2fc   : > { %v796_v28 = vpack.c.bf16 %v795_v27, %v795_v27 }
 0x2fe   : > { %797 = vst [vmem:[%s192_s6] sm:$0xf] %v796_v28 }
 0x2ff PF: > { %s14_s15 = sadd.s32 1, %s1050_s15  }
 0x300   : > { %p11_p4 = scmp.ge.s32.totalorder %s14_s15, 4  }
 0x302   :  { %13 = sbr.rel (!%p11_p4) target bundleno = 1 (0x1), region = 70 }

// kernel: _lambda_.5
= control target key start
LH: loop header
LB: loop body
LE: loop exit
PB: predicated region body
PF: predicated region fallthrough
CT: control target
= control target key end

     0   :  { %s1158_s15 = smov 0   ;;  %s1359_s0 = inlined_call_operand.vmem [shape: bf16[2,8,128], index: 0, kind: input, shape index: {}]   ;;  %s1360_s1 = inlined_call_operand.vmem [shape: bf16[3,128,256], index: 1, kind: input, shape index: {}]   ;;  %s1361_s2 = inlined_call_operand.vmem [shape: bf16[3,16,8], index: 2, kind: input, shape index: {}]   ;;  %s1362_s3 = inlined_call_operand.vmem [shape: f32[1,256], index: 3, kind: input, shape index: {}]   ;;  %s1363_s4 = inlined_call_operand.vmem [shape: f32[2,16,128], index: 4, kind: output, shape index: {}]  }
   0x1 LB: > { %s904_s16 = sadd.s32 4294967295, %s1130_s15   ;;  %p908_p0 = scmp.ge.s32.totalorder %s1130_s15, 1  ;;  %s1130_s15 = sphi %s1158_s15, %s14_s15  }
   0x2   : > { %p161_p1 = scmp.lt.s32.totalorder %s1130_s15, 3 }
   0x4   : > { %p162_p2 = pnand %p908_p0, %p161_p1 }
   0x5   : > { %v1033_v0 = vld [vmem:[%s1360_s1 + $0x4] ss:$8 sps:$4 sm:$0xff] (!%p162_p2)   ;;  %v1035_v1 = vld [vmem:[%s1360_s1] ss:$8 sps:$4 sm:$0xff] (!%p162_p2)   ;;  %v1132_v2 = vmov (!%p162_p2), 0   ;;  %p186_p3 = scmp.lt.s32.totalorder (!%p162_p2), %s904_s16, 1 }
   0x6   : > { %165 = sbr.rel (%p162_p2) target bundleno = 793 (0x319), region = 36  ;;  %337 = vmatprep.mubr.bf16.mxu0 (!%p162_p2), %v1132_v2  ;;  %398 = vmatprep.mubr.bf16.mxu1 (!%p162_p2), %v1132_v2  ;;  %v1036_v3 = vld [vmem:[%s1360_s1 + $0x14] ss:$8 sps:$4 sm:$0xff] (!%p162_p2)   ;;  %v1038_v4 = vld [vmem:[%s1360_s1 + $0x10] ss:$8 sps:$4 sm:$0xff] (!%p162_p2)   ;;  %vm359_vm0 = vcmask (!%p162_p2), 1043456  }
   0x7   : > { %305 = vmatprep.subr.bf16.mxu0 (!%p162_p2), %v1033_v0  ;;  %v1039_v5 = vld [vmem:[%s1360_s1 + $0x24] ss:$8 sps:$4 sm:$0xff] (!%p162_p2)   ;;  %v1041_v6 = vld [vmem:[%s1360_s1 + $0x20] ss:$8 sps:$4 sm:$0xff] (!%p162_p2)   ;;  %v1042_v7 = vld [vmem:[%s1360_s1 + $0x34] ss:$8 sps:$4 sm:$0xff] (!%p162_p2)  }
   0x8   : > { %306 = vmatpush1.bf16.msra.mxu0 (!%p162_p2), %v1035_v1  ;;  %v1044_v8 = vld [vmem:[%s1360_s1 + $0x30] ss:$8 sps:$4 sm:$0xff] (!%p162_p2)   ;;  %v1045_v9 = vld [vmem:[%s1360_s1 + $0x44] ss:$8 sps:$4 sm:$0xff] (!%p162_p2)   ;;  %v1047_v10 = vld [vmem:[%s1360_s1 + $0x40] ss:$8 sps:$4 sm:$0xff] (!%p162_p2)  }
   0x9   : > { %307 = vmatprep.subr.bf16.mxu0 (!%p162_p2), %v1036_v3  ;;  %v1048_v11 = vld [vmem:[%s1360_s1 + $0x54] ss:$8 sps:$4 sm:$0xff] (!%p162_p2)   ;;  %v1050_v12 = vld [vmem:[%s1360_s1 + $0x50] ss:$8 sps:$4 sm:$0xff] (!%p162_p2)   ;;  %v1051_v13 = vld [vmem:[%s1360_s1 + $0x64] ss:$8 sps:$4 sm:$0xff] (!%p162_p2)  }
   0xa   : > { %v1053_v14 = vld [vmem:[%s1360_s1 + $0x60] ss:$8 sps:$4 sm:$0xff] (!%p162_p2)   ;;  %v1054_v15 = vld [vmem:[%s1360_s1 + $0x74] ss:$8 sps:$4 sm:$0xff] (!%p162_p2)   ;;  %v1056_v16 = vld [vmem:[%s1360_s1 + $0x70] ss:$8 sps:$4 sm:$0xff] (!%p162_p2)  }
   0xb   : > { %v1064_v18 = vld [vmem:[%s1360_s1 + $0x100] ss:$8 sps:$4 sm:$0xff] (!%p162_p2)   ;;  %v1066_v19 = vld [vmem:[%s1360_s1 + $0x104] ss:$8 sps:$4 sm:$0xff] (!%p162_p2)   ;;  %v1070_v20 = vld [vmem:[%s1360_s1 + $0x110] ss:$8 sps:$4 sm:$0xff] (!%p162_p2)  }
   0xc   : > { %308 = vmatpush1.bf16.msra.mxu0 (!%p162_p2), %v1038_v4  ;;  %v1072_v21 = vld [vmem:[%s1360_s1 + $0x114] ss:$8 sps:$4 sm:$0xff] (!%p162_p2)   ;;  %v1076_v22 = vld [vmem:[%s1360_s1 + $0x120] ss:$8 sps:$4 sm:$0xff] (!%p162_p2)   ;;  %v1078_v23 = vld [vmem:[%s1360_s1 + $0x124] ss:$8 sps:$4 sm:$0xff] (!%p162_p2)  }
   0xd   : > { %309 = vmatprep.subr.bf16.mxu0 %v1039_v5  ;;  %s1365_s16 = smov (!%p186_p3, %s904_s16), 1  ;;  %v1082_v24 = vld [vmem:[%s1360_s1 + $0x130] ss:$8 sps:$4 sm:$0xff]   ;;  %v1084_v25 = vld [vmem:[%s1360_s1 + $0x134] ss:$8 sps:$4 sm:$0xff]   ;;  %v1060_v42 = vld [vmem:[%s1361_s2] sm:$0xff]  }
   0xe   : > { %s909_s23 = sshll.u32 %s1365_s16, 2  ;;  %v1088_v26 = vld [vmem:[%s1360_s1 + $0x140] ss:$8 sps:$4 sm:$0xff]   ;;  %v1090_v27 = vld [vmem:[%s1360_s1 + $0x144] ss:$8 sps:$4 sm:$0xff]   ;;  %vm355_vm1 = vcmask 64512  }
   0xf   : > { %s189_s28 = scalar_lea.vmem %s1359_s0, %s909_s23  ;;  %v1094_v28 = vld [vmem:[%s1360_s1 + $0x150] ss:$8 sps:$4 sm:$0xff]   ;;  %v1096_v29 = vld [vmem:[%s1360_s1 + $0x154] ss:$8 sps:$4 sm:$0xff]   ;;  %v1100_v30 = vld [vmem:[%s1360_s1 + $0x160] ss:$8 sps:$4 sm:$0xff]  }
  0x10   : > { %310 = vmatpush1.bf16.msra.mxu0 %v1041_v6  ;;  %v1226_v17 = vld [vmem:[%s189_s28] sm:$0xf]  ;;  %v1102_v31 = vld [vmem:[%s1360_s1 + $0x164] ss:$8 sps:$4 sm:$0xff]   ;;  %v1103_v32 = vld [vmem:[%s1360_s1 + $0x170] ss:$8 sps:$4 sm:$0xff]  }
  0x11   : > { %311 = vmatprep.subr.bf16.mxu0 %v1042_v7  ;;  %v1105_v33 = vld [vmem:[%s1360_s1 + $0x174] ss:$8 sps:$4 sm:$0xff]   ;;  %v1059_v39 = vld [vmem:[%s1360_s1 + $0x84] ss:$8 sps:$4 sm:$0xff]   ;;  %v1057_v43 = vld [vmem:[%s1360_s1 + $0x80] ss:$8 sps:$4 sm:$0xff]  }
  0x12   : > { %v1063_v44 = vld [vmem:[%s1360_s1 + $0x94] ss:$8 sps:$4 sm:$0xff]   ;;  %v1061_v45 = vld [vmem:[%s1360_s1 + $0x90] ss:$8 sps:$4 sm:$0xff]   ;;  %v1069_v46 = vld [vmem:[%s1360_s1 + $0xa4] ss:$8 sps:$4 sm:$0xff]  }
  0x13   : > { %v1067_v47 = vld [vmem:[%s1360_s1 + $0xa0] ss:$8 sps:$4 sm:$0xff]   ;;  %v1075_v48 = vld [vmem:[%s1360_s1 + $0xb4] ss:$8 sps:$4 sm:$0xff]   ;;  %v1073_v49 = vld [vmem:[%s1360_s1 + $0xb0] ss:$8 sps:$4 sm:$0xff]  }
  0x14   : > { %312 = vmatpush1.bf16.msra.mxu0 %v1044_v8  ;;  %v1081_v50 = vld [vmem:[%s1360_s1 + $0xc4] ss:$8 sps:$4 sm:$0xff]   ;;  %v1079_v51 = vld [vmem:[%s1360_s1 + $0xc0] ss:$8 sps:$4 sm:$0xff]   ;;  %v1087_v52 = vld [vmem:[%s1360_s1 + $0xd4] ss:$8 sps:$4 sm:$0xff]  }
  0x15   : > { %313 = vmatprep.subr.bf16.mxu0 %v1045_v9  ;;  %v1085_v53 = vld [vmem:[%s1360_s1 + $0xd0] ss:$8 sps:$4 sm:$0xff]   ;;  %v1093_v54 = vld [vmem:[%s1360_s1 + $0xe4] ss:$8 sps:$4 sm:$0xff]   ;;  %v1091_v55 = vld [vmem:[%s1360_s1 + $0xe0] ss:$8 sps:$4 sm:$0xff]  }
  0x16   : > { %v1099_v56 = vld [vmem:[%s1360_s1 + $0xf4] ss:$8 sps:$4 sm:$0xff]   ;;  %v1097_v57 = vld [vmem:[%s1360_s1 + $0xf0] ss:$8 sps:$4 sm:$0xff]   ;;  %v1106_v8 = vld [vmem:[%s1361_s2 + $0x8] sm:$0xff]   ;;  %s1011_s29 = sshll.u32 %s1365_s16, 4 }
  0x17   : > { %s194_s6 = scalar_lea.vmem %s1363_s4, %s1011_s29 }
  0x18   : > { %314 = vmatpush1.bf16.msra.mxu0 %v1047_v10  ;;  %v1107_v10 = vld [vmem:[%s1361_s2 + $0x10] sm:$0xff]  }
  0x19   : > { %315 = vmatprep.subr.bf16.mxu0 %v1048_v11  ;;  %v199_v11 = vlaneseq }
  0x1c   : > { %316 = vmatpush1.bf16.msra.mxu0 %v1050_v12  ;;  %v200_v12 = vshrl.u32 %v199_v11, 7 }
  0x1d   : > { %317 = vmatprep.subr.bf16.mxu0 %v1051_v13 }
  0x1e   : > { %v205_v13 = vsub.s32 1, %v200_v12 }
  0x20   : > { %318 = vmatpush1.bf16.msra.mxu0 %v1053_v14  ;;  %v197_v14 = vld [vmem:[%s1362_s3] sm:$0x3] }
  0x21   : > { %319 = vmatprep.subr.bf16.mxu0 %v1054_v15  ;;  %v206_v15 = vrot.slane %v197_v14, %v205_v13 }
  0x24   : > { %320 = vmatpush1.bf16.msra.mxu0 %v1056_v16 }
  0x25   : > { %714 = vmatprep.subr.bf16.mxu0 %v1066_v19 }
  0x27   : > { %338 = vmatmul.mubr.bf16.vlgmr.msra.gmra.mrb[0].mxu0 %v1226_v17 }
  0x28   : > { %746 = vmatprep.mubr.bf16.mxu0 %v1132_v2  ;;  %715 = vmatpush1.bf16.msra.mxu0 %v1064_v18 }
  0x29   : > { %716 = vmatprep.subr.bf16.mxu0 %v1072_v21 }
  0x2c   : > { %717 = vmatpush1.bf16.msra.mxu0 %v1070_v20 }
  0x2d   : > { %718 = vmatprep.subr.bf16.mxu0 %v1078_v23 }
  0x30   : > { %719 = vmatpush1.bf16.msra.mxu0 %v1076_v22 }
  0x31   : > { %720 = vmatprep.subr.bf16.mxu0 %v1084_v25 }
  0x34   : > { %721 = vmatpush1.bf16.msra.mxu0 %v1082_v24 }
  0x35   : > { %722 = vmatprep.subr.bf16.mxu0 %v1090_v27  ;;  %v201_v27 = vsub.s32 0, %v200_v12 }
  0x38   : > { %723 = vmatpush1.bf16.msra.mxu0 %v1088_v26 }
  0x39   : > { %724 = vmatprep.subr.bf16.mxu0 %v1096_v29 }
  0x3c   : > { %725 = vmatpush1.bf16.msra.mxu0 %v1094_v28  ;;  %v202_v28 = vrot.slane %v197_v14, %v201_v27 }
  0x3d   : > { %726 = vmatprep.subr.bf16.mxu0 %v1102_v31 }
  0x40   : > { %727 = vmatpush1.bf16.msra.mxu0 %v1100_v30 }
  0x41   : > { %728 = vmatprep.subr.bf16.mxu0 %v1105_v33 }
  0x44   : > { %729 = vmatpush1.bf16.msra.mxu0 %v1103_v32 }
  0x47   : > { %747 = vmatmul.mubr.bf16.vlgmr.msra.gmra.mrb[4].mxu0 %v1226_v17 }
  0xfa   : > { %v339_v34 = vpop.f32.mrb[0].mxu0 }
  0xfb   : > { %v348_v35 = vpack.c.bf16 %v339_v34, %v339_v34  ;;  %v341_v36 = vpop.f32.mrb[1].mxu0 }
  0xfc   : > { %v349_v37 = vpack.c.bf16 %v341_v36, %v341_v36  ;;  %v343_v38 = vpop.f32.mrb[2].mxu0 }
  0xfd   : > { %v344_v40 = vpop.f32.mrb[3].mxu0  ;;  %v361_v41 = vsel %vm359_vm0, %v348_v35, 0 }
  0xfe   : > { %929 = vmatprep.subr.msk.bf16.mxu1 %vm359_vm0, %v349_v37 }
  0xff   : > { %367 = vmatpush1.bf16.msra.mxu1 %v361_v41 }
 0x100   : > { %510 = vmatprep.subr.bf16.mxu1 %v1059_v39 }
 0x102   : > { %930 = vmatmul.mubr.msk.bf16.vlgmr.msra.gmra.mrb[0].mxu1 %vm355_vm1, %v1060_v42 }
 0x103   : > { %511 = vmatpush1.bf16.msra.mxu1 %v1057_v43  ;;  %542 = vmatprep.mubr.bf16.mxu1 %v1132_v2 }
 0x104   : > { %512 = vmatprep.subr.bf16.mxu1 %v1063_v44 }
 0x107   : > { %513 = vmatpush1.bf16.msra.mxu1 %v1061_v45 }
 0x108   : > { %514 = vmatprep.subr.bf16.mxu1 %v1069_v46 }
 0x10b   : > { %515 = vmatpush1.bf16.msra.mxu1 %v1067_v47 }
 0x10c   : > { %516 = vmatprep.subr.bf16.mxu1 %v1075_v48 }
 0x10f   : > { %517 = vmatpush1.bf16.msra.mxu1 %v1073_v49 }
 0x110   : > { %518 = vmatprep.subr.bf16.mxu1 %v1081_v50 }
 0x113   : > { %519 = vmatpush1.bf16.msra.mxu1 %v1079_v51 }
 0x114   : > { %520 = vmatprep.subr.bf16.mxu1 %v1087_v52 }
 0x117   : > { %521 = vmatpush1.bf16.msra.mxu1 %v1085_v53 }
 0x118   : > { %522 = vmatprep.subr.bf16.mxu1 %v1093_v54 }
 0x11a   : > { %v748_v58 = vpop.f32.mrb[4].mxu0 }
 0x11b   : > { %523 = vmatpush1.bf16.msra.mxu1 %v1091_v55  ;;  %v750_v59 = vpop.f32.mrb[5].mxu0  ;;  %v758_v4 = vpack.c.bf16 %v748_v58, %v748_v58 }
 0x11c   : > { %524 = vmatprep.subr.bf16.mxu1 %v1099_v56  ;;  %v752_v60 = vpop.f32.mrb[6].mxu0  ;;  %v759_v5 = vpack.c.bf16 %v750_v59, %v750_v59 }
 0x11d   : > { %v753_v61 = vpop.f32.mrb[7].mxu0  ;;  %v769_v9 = vsel %vm359_vm0, %v758_v4, 0 }
 0x11f   : > { %525 = vmatpush1.bf16.msra.mxu1 %v1097_v57 }
 0x122   : > { %543 = vmatmul.mubr.bf16.vlgmr.msra.gmra.mrb[4].mxu1 %v1226_v17 }
 0x123   : > { %602 = vmatprep.mubr.bf16.mxu1 %v1132_v2 }
 0x1f5   : > { %v544_v62 = vpop.f32.mrb[4].mxu1 }
 0x1f6   : > { %v554_v63 = vpack.c.bf16 %v544_v62, %v544_v62  ;;  %v546_v0 = vpop.f32.mrb[5].mxu1 }
 0x1f7   : > { %v555_v1 = vpack.c.bf16 %v546_v0, %v546_v0  ;;  %v548_v3 = vpop.f32.mrb[6].mxu1 }
 0x1f8   : > { %v565_v6 = vsel %vm359_vm0, %v554_v63, 0  ;;  %v549_v7 = vpop.f32.mrb[7].mxu1 }
 0x1f9   : > { %966 = vmatprep.subr.msk.bf16.mxu1 %vm359_vm0, %v555_v1 }
 0x1fa   : > { %571 = vmatpush1.bf16.msra.mxu1 %v565_v6 }
 0x1fb   : > { %1003 = vmatprep.subr.msk.bf16.mxu1 %vm359_vm0, %v759_v5 }
 0x1fd   : > { %967 = vmatmul.mubr.msk.bf16.vlgmr.msra.gmra.mrb[0].mxu1 %vm355_vm1, %v1106_v8 }
 0x1fe   : > { %775 = vmatpush1.bf16.msra.mxu1 %v769_v9  ;;  %806 = vmatprep.mubr.bf16.mxu1 %v1132_v2 }
 0x209   : > { %1004 = vmatmul.mubr.msk.bf16.vlgmr.msra.gmra.mrb[0].mxu1 %vm355_vm1, %v1107_v10 }
 0x2dc   : > { %v808_v16 = vpop.f32.mrb[0].mxu1 }
 0x2dd   : > { %v810_v17 = vpop.f32.mrb[1].mxu1  ;;  %v1012_v29 = vadd.f32 %v808_v16, %v202_v28 }
 0x2de   : > { %v1013_v18 = vadd.f32 %v810_v17, %v206_v15  ;;  %v812_v19 = vpop.f32.mrb[2].mxu1 }
 0x2df   : > { %v814_v20 = vpop.f32.mrb[3].mxu1  ;;  %v1014_v32 = vadd.f32 %v812_v19, %v202_v28 }
 0x2e0   : > { %v1005_v2 = vmul.f32 -1.442695, %v1013_v18  ;;  %v1015_v21 = vadd.f32 %v814_v20, %v206_v15 }
 0x2e2   : > { %1108 = vpow2.f32 %v1005_v2  ;;  %v1006_v22 = vmul.f32 -1.442695, %v1015_v21 }
 0x2e4   : > { %1110 = vpow2.f32 %v1006_v22 }
 0x2ec   : > { %v1109_v23 = vpop.eup %1108 }
 0x2ed   : > { %v827_v24 = vadd.f32 1.0, %v1109_v23 }
 0x2ee   : > { %v1111_v25 = vpop.eup %1110 }
 0x2ef   : > { %1112 = vrcp.f32 %v827_v24  ;;  %v828_v26 = vadd.f32 1.0, %v1111_v25 }
 0x2f1   : > { %1114 = vrcp.f32 %v828_v26 }
 0x2f9   : > { %v1113_v30 = vpop.eup %1112 }
 0x2fa   : > { %v833_v31 = vmul.f32 %v1113_v30, %v1012_v29 }
 0x2fb   : > { %v1115_v33 = vpop.eup %1114 }
 0x2fc   : > { %v1007_v34 = vmul.f32 -1.442695, %v833_v31  ;;  %v834_v35 = vmul.f32 %v1115_v33, %v1014_v32 }
 0x2fe   : > { %1116 = vpow2.f32 %v1007_v34  ;;  %v1008_v36 = vmul.f32 -1.442695, %v834_v35 }
 0x300   : > { %1118 = vpow2.f32 %v1008_v36 }
 0x308   : > { %v1117_v37 = vpop.eup %1116 }
 0x309   : > { %v841_v38 = vadd.f32 1.0, %v1117_v37 }
 0x30a   : > { %v1119_v39 = vpop.eup %1118 }
 0x30b   : > { %1120 = vrcp.f32 %v841_v38  ;;  %v842_v40 = vadd.f32 1.0, %v1119_v39 }
 0x30d   : > { %1122 = vrcp.f32 %v842_v40 }
 0x315   : > { %v1121_v41 = vpop.eup %1120 }
 0x316   : > { %847 = vst [vmem:[%s194_s6] sm:$0xff] %v1121_v41 }
 0x317   : > { %v1123_v42 = vpop.eup %1122 }
 0x318   : > { %848 = vst [vmem:[%s194_s6 + $0x8] sm:$0xff] %v1123_v42 }
 0x319 PF: > { %s14_s15 = sadd.s32 1, %s1130_s15  }
 0x31a   : > { %p11_p4 = scmp.ge.s32.totalorder %s14_s15, 4  }
 0x31c   :  { %13 = sbr.rel (!%p11_p4) target bundleno = 1 (0x1), region = 70 }

</bundles_post_ra>
